<compile_context>
chip_gen: v6e
topology: v6e:2x2x1
jax: 0.10.0
libtpu: 0.0.40
codegen_flags: <defaults>
</compile_context>

<pallas_src>
import math
import functools

import jax
import jax.numpy as jnp
from jax.experimental import pallas as pl
from jax.experimental.pallas import tpu as pltpu


# ----------------------------- model config (small) -----------------------------
INPUT_SIZE = (16, 16)
PATCH = 8
IN_CHANS = 3
EMBED = 32
DEPTH = 2
NUM_HEADS = 4
HEAD_DIM = EMBED // NUM_HEADS
MLP_RATIO = 4.0
MLP_HIDDEN = int(EMBED * MLP_RATIO)                                  # 128
NUM_FEATURES = 16
FEAT_HIDDEN = NUM_FEATURES * 4                                       # 64
NUM_PATCHES = (INPUT_SIZE[0] // PATCH) * (INPUT_SIZE[1] // PATCH)    # 4
NUM_TOKENS = NUM_PATCHES + 1                                         # 5 (cls + patches)
NT_PAD = 8                                                           # tokens padded to a sublane tile
LOG_NT = 3                                                           # log2(NT_PAD)
LN_EPS = 1e-6
CPP = IN_CHANS * PATCH * PATCH                                       # 192


# ----------------------------- fused Pallas kernel -------------------------------
def _vit_fused_kernel(
    patches_ref,                 # (B*NT_PAD, CPP) f32 ; cls/pad rows are zero
    add_ref,                     # (NT_PAD, E)     f32 ; cls+pos / bias+pos / 0
    patch_w_ref,                 # (CPP, E)        bf16
    ln1_g_ref, ln1_b_ref,        # (DEPTH, E)      f32
    wqkv_ref,                    # (DEPTH*E, 3E)   bf16 ; [q*scale | k | v] columns
    wo_ref,                      # (DEPTH*E, E)    bf16
    ln2_g_ref, ln2_b_ref,        # (DEPTH, E)      f32
    w1_ref, b1_ref,              # (DEPTH*E, MH) bf16, (DEPTH, MH) f32
    w2_ref, b2_ref,              # (DEPTH*MH, E) bf16, (DEPTH, E)  f32
    lnf_g_ref, lnf_b_ref,        # (1, E)          f32
    fw1_ref, fb1_ref, fw2_ref,   # (E, FH) bf16, (1, FH) f32, (FH, NF) bf16
    out_ref,                     # (B*NT_PAD, NF)  f32
):
    f32 = jnp.float32
    bf16 = jnp.bfloat16
    bt = patches_ref.shape[0]            # B * NT_PAD rows (batch-major, token-minor)
    n_batch = bt // NT_PAD
    sbt = NUM_HEADS * bt                 # stacked (head, batch, token) rows

    def layer_norm(t, g, b):
        # single-pass: independent sum / sum-of-squares reduces (shorter XLU chain)
        inv_n = 1.0 / t.shape[-1]
        s1 = jnp.sum(t, axis=-1, keepdims=True)
        s2 = jnp.sum(t * t, axis=-1, keepdims=True)
        mu = s1 * inv_n
        var = s2 * inv_n - mu * mu
        return (t - mu) * jax.lax.rsqrt(var + LN_EPS) * g + b

    def gelu(t):
        # exact erf-based GELU (nn.GELU() default)
        return 0.5 * t * (1.0 + jax.lax.erf(t * 0.7071067811865476))

    # block-diagonal (batch,head) mask; padded key tokens (>= NUM_TOKENS) masked out.
    ridx = jax.lax.broadcasted_iota(jnp.int32, (sbt, sbt), 0)
    cidx = jax.lax.broadcasted_iota(jnp.int32, (sbt, sbt), 1)
    same_bh = jnp.right_shift(ridx, LOG_NT) == jnp.right_shift(cidx, LOG_NT)
    key_ok = jnp.bitwise_and(cidx, NT_PAD - 1) < NUM_TOKENS
    attn_mask = same_bh & key_ok

    # patch embedding + (cls token | conv bias) + positional embedding, all folded:
    # zero rows (cls/pad) contribute nothing from the matmul; add carries the rest.
    add = jnp.concatenate([add_ref[...]] * n_batch, axis=0)           # (bt, E)
    x = jnp.dot(patches_ref[...].astype(bf16), patch_w_ref[...],
                preferred_element_type=f32) + add

    for d in range(DEPTH):
        # ---------------- attention: fused QKV + block-diagonal softmax -----------
        h = layer_norm(x, ln1_g_ref[d:d + 1, :], ln1_b_ref[d:d + 1, :])
        qkv = jnp.dot(h.astype(bf16), wqkv_ref[d * EMBED:(d + 1) * EMBED, :],
                      preferred_element_type=f32)                     # (bt, 3E); q pre-scaled
        q_s = jnp.concatenate(
            [qkv[:, hh * HEAD_DIM:(hh + 1) * HEAD_DIM]
             for hh in range(NUM_HEADS)], axis=0)                     # (sbt, Dh)
        k_s = jnp.concatenate(
            [qkv[:, EMBED + hh * HEAD_DIM:EMBED + (hh + 1) * HEAD_DIM]
             for hh in range(NUM_HEADS)], axis=0)
        v_s = jnp.concatenate(
            [qkv[:, 2 * EMBED + hh * HEAD_DIM:2 * EMBED + (hh + 1) * HEAD_DIM]
             for hh in range(NUM_HEADS)], axis=0)

        s = jax.lax.dot_general(q_s.astype(bf16), k_s.astype(bf16),
                                (((1,), (1,)), ((), ())),
                                preferred_element_type=f32)           # (sbt, sbt)
        s = jnp.where(attn_mask, s, -1e30)
        s = s - jnp.max(s, axis=-1, keepdims=True)
        p = jnp.exp(s)                                                # masked entries -> exactly 0
        p = p * pl.reciprocal(jnp.sum(p, axis=-1, keepdims=True), approx=True)
        o_s = jnp.dot(p.astype(bf16), v_s.astype(bf16),
                      preferred_element_type=f32)                     # (sbt, Dh)

        # un-stack heads along lanes and apply one (E,E) output projection
        o_cat = jnp.concatenate(
            [o_s[hh * bt:(hh + 1) * bt, :] for hh in range(NUM_HEADS)], axis=1)  # (bt, E)
        x = x + jnp.dot(o_cat.astype(bf16), wo_ref[d * EMBED:(d + 1) * EMBED, :],
                        preferred_element_type=f32)                   # DropPath == identity (eval)

        # --------------------------------- MLP -----------------------------------
        h2 = layer_norm(x, ln2_g_ref[d:d + 1, :], ln2_b_ref[d:d + 1, :])
        m = gelu(jnp.dot(h2.astype(bf16), w1_ref[d * EMBED:(d + 1) * EMBED, :],
                         preferred_element_type=f32) + b1_ref[d:d + 1, :])
        x = x + jnp.dot(m.astype(bf16), w2_ref[d * MLP_HIDDEN:(d + 1) * MLP_HIDDEN, :],
                        preferred_element_type=f32) + b2_ref[d:d + 1, :]

    # ---------------- final LN + feature MLP + L2 normalize ----------------------
    # TODO(synk): computed for all padded rows (8x redundant); gather cls rows only
    # once batch grows — negligible at B=2.
    xf = layer_norm(x, lnf_g_ref[...], lnf_b_ref[...])
    f = gelu(jnp.dot(xf.astype(bf16), fw1_ref[...], preferred_element_type=f32)
             + fb1_ref[...])
    f = jnp.dot(f.astype(bf16), fw2_ref[...], preferred_element_type=f32)  # fc2 bias=False
    nrm = jnp.sqrt(jnp.sum(f * f, axis=-1, keepdims=True))
    out_ref[...] = (f / jnp.maximum(nrm, 1e-12)).astype(out_ref.dtype)


# ----------------------------- parameter init (canonical) -------------------------
def _trunc_normal(key, shape, std=0.02):
    return (jax.random.truncated_normal(key, -2.0, 2.0, shape) * std).astype(jnp.float32)


def init_params(key):
    keys = iter(jax.random.split(key, 32))
    p = {}

    # patch embedding: conv(kernel=stride=patch) == matmul with (C*p*p, E) weight
    val = math.sqrt(6.0 / float(3 * PATCH ** 2 + EMBED))
    p["patch_w"] = jax.random.uniform(next(keys), (CPP, EMBED),
                                      minval=-val, maxval=val).astype(jnp.float32)
    p["patch_b"] = jnp.zeros((EMBED,), jnp.float32)
    p["cls_token"] = (jax.random.normal(next(keys), (1, 1, EMBED)) * 1e-6).astype(jnp.float32)
    p["pos_embed"] = (jax.random.normal(next(keys), (1, NUM_TOKENS, EMBED)) * 0.02).astype(jnp.float32)

    def tn(shape):
        return _trunc_normal(next(keys), shape)

    p["ln1_g"] = jnp.ones((DEPTH, EMBED), jnp.float32)
    p["ln1_b"] = jnp.zeros((DEPTH, EMBED), jnp.float32)
    p["ln2_g"] = jnp.ones((DEPTH, EMBED), jnp.float32)
    p["ln2_b"] = jnp.zeros((DEPTH, EMBED), jnp.float32)
    # qkv_bias=False -> no q/k/v/o biases; weights stored (in, out)
    p["wq"] = jnp.stack([tn((EMBED, EMBED)) for _ in range(DEPTH)])
    p["wk"] = jnp.stack([tn((EMBED, EMBED)) for _ in range(DEPTH)])
    p["wv"] = jnp.stack([tn((EMBED, EMBED)) for _ in range(DEPTH)])
    p["wo"] = jnp.stack([tn((EMBED, EMBED)) for _ in range(DEPTH)])
    p["w1"] = jnp.stack([tn((EMBED, MLP_HIDDEN)) for _ in range(DEPTH)])
    p["b1"] = jnp.zeros((DEPTH, MLP_HIDDEN), jnp.float32)
    p["w2"] = jnp.stack([tn((MLP_HIDDEN, EMBED)) for _ in range(DEPTH)])
    p["b2"] = jnp.zeros((DEPTH, EMBED), jnp.float32)
    p["lnf_g"] = jnp.ones((EMBED,), jnp.float32)
    p["lnf_b"] = jnp.zeros((EMBED,), jnp.float32)
    # features Mlp: fc1 has bias, fc2 bias=False
    p["f_w1"] = tn((EMBED, FEAT_HIDDEN))
    p["f_b1"] = jnp.zeros((FEAT_HIDDEN,), jnp.float32)
    p["f_w2"] = tn((FEAT_HIDDEN, NUM_FEATURES))
    return p


def pack_params(p):
    """Repack canonical params into the kernel's fused / bf16 layout."""
    bf = jnp.bfloat16
    scale = 1.0 / math.sqrt(HEAD_DIM)
    # fused QKV with the softmax scale folded into the Q columns
    wqkv = jnp.concatenate([p["wq"] * scale, p["wk"], p["wv"]], axis=-1)   # (D, E, 3E)
    add = jnp.concatenate(
        [p["cls_token"].reshape(1, EMBED) + p["pos_embed"][0, :1],
         p["patch_b"].reshape(1, EMBED) + p["pos_embed"][0, 1:],
         jnp.zeros((NT_PAD - NUM_TOKENS, EMBED), jnp.float32)], axis=0)    # (NT_PAD, E)
    return {
        "add": add,
        "patch_w": p["patch_w"].astype(bf),
        "ln1_g": p["ln1_g"], "ln1_b": p["ln1_b"],
        "ln2_g": p["ln2_g"], "ln2_b": p["ln2_b"],
        "wqkv": wqkv.reshape(DEPTH * EMBED, 3 * EMBED).astype(bf),
        "wo": p["wo"].reshape(DEPTH * EMBED, EMBED).astype(bf),
        "w1": p["w1"].reshape(DEPTH * EMBED, MLP_HIDDEN).astype(bf),
        "b1": p["b1"],
        "w2": p["w2"].reshape(DEPTH * MLP_HIDDEN, EMBED).astype(bf),
        "b2": p["b2"],
        "lnf_g": p["lnf_g"].reshape(1, EMBED), "lnf_b": p["lnf_b"].reshape(1, EMBED),
        "f_w1": p["f_w1"].astype(bf),
        "f_b1": p["f_b1"].reshape(1, FEAT_HIDDEN),
        "f_w2": p["f_w2"].astype(bf),
    }


# ----------------------------- forward pass --------------------------------------
def vit_forward(x, params):
    """x: (B, C, H, W) f32 NCHW -> L2-normalized features (B, NUM_FEATURES)."""
    B, C, H, W = x.shape
    hp, wp = H // PATCH, W // PATCH
    n_patch = hp * wp
    pad_rows = NT_PAD - 1 - n_patch

    # patch extraction (glue): (B, C, H, W) -> (B, n_patch, C*p*p), order (c, ph, pw)
    patches = x.reshape(B, C, hp, PATCH, wp, PATCH)
    patches = jnp.transpose(patches, (0, 2, 4, 1, 3, 5)).reshape(B, n_patch, CPP)
    # row layout per image: [cls placeholder (zeros), patches, padding (zeros)]
    patches = jnp.concatenate(
        [jnp.zeros((B, 1, CPP), patches.dtype),
         patches,
         jnp.zeros((B, pad_rows, CPP), patches.dtype)], axis=1,
    ).reshape(B * NT_PAD, CPP)

    out = pl.pallas_call(
        _vit_fused_kernel,
        out_shape=jax.ShapeDtypeStruct((B * NT_PAD, NUM_FEATURES), jnp.float32),
        # no grid / no BlockSpecs: every operand is a whole-array VMEM block,
        # single kernel invocation (total footprint ~100 KB << VMEM on v5e/v6e/v7x).
        # TODO(synk): on v7x add a parallel batch grid (or pl.core_map over the
        # 2-TC mesh) once batch throughput matters; size blocks for 64 MiB VMEM.
    )(
        patches, params["add"], params["patch_w"],
        params["ln1_g"], params["ln1_b"],
        params["wqkv"], params["wo"],
        params["ln2_g"], params["ln2_b"],
        params["w1"], params["b1"], params["w2"], params["b2"],
        params["lnf_g"], params["lnf_b"],
        params["f_w1"], params["f_b1"], params["f_w2"],
    )
    # features were computed for every (padded) token row; keep only the cls row.
    return out.reshape(B, NT_PAD, NUM_FEATURES)[:, 0, :]
    # TODO(synk): return_attn=True path (attn[:, :, 0, 1:]) and masks/mask_token path not wired out.


# ----------------------------- pure-JAX reference ---------------------------------
def vit_reference(x, p):
    hi = jax.lax.Precision.HIGHEST
    B, C, H, W = x.shape
    hp, wp = H // PATCH, W // PATCH
    n_patch = hp * wp

    patches = x.reshape(B, C, hp, PATCH, wp, PATCH)
    patches = jnp.transpose(patches, (0, 2, 4, 1, 3, 5)).reshape(B, n_patch, CPP)
    tok = jnp.dot(patches, p["patch_w"], precision=hi) + p["patch_b"]
    cls = jnp.broadcast_to(p["cls_token"], (B, 1, EMBED))
    xt = jnp.concatenate([cls, tok], axis=1) + p["pos_embed"]

    def ln(t, g, b):
        mu = t.mean(-1, keepdims=True)
        var = ((t - mu) ** 2).mean(-1, keepdims=True)
        return (t - mu) / jnp.sqrt(var + LN_EPS) * g + b

    def gelu(t):
        return 0.5 * t * (1.0 + jax.lax.erf(t * 0.7071067811865476))

    def heads(t):  # (B, N, E) -> (B, H, N, Dh)
        return t.reshape(B, -1, NUM_HEADS, HEAD_DIM).transpose(0, 2, 1, 3)

    for d in range(DEPTH):
        h = ln(xt, p["ln1_g"][d], p["ln1_b"][d])
        q = heads(jnp.einsum("bne,ef->bnf", h, p["wq"][d], precision=hi))
        k = heads(jnp.einsum("bne,ef->bnf", h, p["wk"][d], precision=hi))
        v = heads(jnp.einsum("bne,ef->bnf", h, p["wv"][d], precision=hi))
        s = jnp.einsum("bhnd,bhmd->bhnm", q, k, precision=hi) / math.sqrt(HEAD_DIM)
        a = jax.nn.softmax(s, axis=-1)
        o = jnp.einsum("bhnm,bhmd->bhnd", a, v, precision=hi)
        o = o.transpose(0, 2, 1, 3).reshape(B, -1, EMBED)
        xt = xt + jnp.einsum("bne,ef->bnf", o, p["wo"][d], precision=hi)
        h2 = ln(xt, p["ln2_g"][d], p["ln2_b"][d])
        m = gelu(jnp.einsum("bne,ef->bnf", h2, p["w1"][d], precision=hi) + p["b1"][d])
        xt = xt + jnp.einsum("bnf,fe->bne", m, p["w2"][d], precision=hi) + p["b2"][d]

    xf = ln(xt, p["lnf_g"], p["lnf_b"])
    f = gelu(jnp.dot(xf[:, 0], p["f_w1"], precision=hi) + p["f_b1"])
    f = jnp.dot(f, p["f_w2"], precision=hi)
    n = jnp.linalg.norm(f, axis=-1, keepdims=True)
    return f / jnp.maximum(n, 1e-12)


# ----------------------------- main -----------------------------------------------
if __name__ == "__main__":
    key = jax.random.PRNGKey(0)
    k_params, k_x = jax.random.split(key)
    params = init_params(k_params)
    kparams = pack_params(params)
    x = jax.random.normal(k_x, (2, IN_CHANS, INPUT_SIZE[0], INPUT_SIZE[1]), dtype=jnp.float32)

    fwd = jax.jit(functools.partial(vit_forward, params=kparams))
    out = fwd(x)
    jax.block_until_ready(out)

    assert out.shape == (2, NUM_FEATURES), out.shape
    norms = jnp.linalg.norm(out, axis=-1)
    assert bool(jnp.all(jnp.abs(norms - 1.0) < 1e-3)), norms

    ref = vit_reference(x, params)
    err = float(jnp.max(jnp.abs(out - ref)))
    # bf16 MXU operands + approx reciprocal vs. an f32 HIGHEST-precision reference
    assert err < 3e-2, f"kernel vs reference max abs diff = {err}"

    print("KERNEL_OK")
</pallas_src>

<mosaic_0001>
module attributes {stable_mosaic.version = 11 : i64} {
  func.func @_vit_fused_kernel(%arg0: memref<16x192xf32, #tpu.memory_space<vmem>>, %arg1: memref<8x32xf32, #tpu.memory_space<vmem>>, %arg2: memref<192x32xbf16, #tpu.memory_space<vmem>>, %arg3: memref<2x32xf32, #tpu.memory_space<vmem>>, %arg4: memref<2x32xf32, #tpu.memory_space<vmem>>, %arg5: memref<64x96xbf16, #tpu.memory_space<vmem>>, %arg6: memref<64x32xbf16, #tpu.memory_space<vmem>>, %arg7: memref<2x32xf32, #tpu.memory_space<vmem>>, %arg8: memref<2x32xf32, #tpu.memory_space<vmem>>, %arg9: memref<64x128xbf16, #tpu.memory_space<vmem>>, %arg10: memref<2x128xf32, #tpu.memory_space<vmem>>, %arg11: memref<256x32xbf16, #tpu.memory_space<vmem>>, %arg12: memref<2x32xf32, #tpu.memory_space<vmem>>, %arg13: memref<1x32xf32, #tpu.memory_space<vmem>>, %arg14: memref<1x32xf32, #tpu.memory_space<vmem>>, %arg15: memref<32x64xbf16, #tpu.memory_space<vmem>>, %arg16: memref<1x64xf32, #tpu.memory_space<vmem>>, %arg17: memref<64x16xbf16, #tpu.memory_space<vmem>>, %arg18: memref<16x16xf32, #tpu.memory_space<vmem>>) attributes {dimension_semantics = [], scalar_prefetch = 0 : i64, scratch_operands = 0 : i64, tpu.core_type = #tpu.core_type<tc>} {
    %0 = tpu.iota {dimensions = array<i32: 0>} : vector<64x64xi32>
    %1 = tpu.iota {dimensions = array<i32: 1>} : vector<64x64xi32>
    %c3_i32 = arith.constant 3 : i32
    %2 = vector.broadcast %c3_i32 : i32 to vector<64x64xi32>
    %3 = arith.shrsi %0, %2 : vector<64x64xi32>
    %c3_i32_0 = arith.constant 3 : i32
    %4 = vector.broadcast %c3_i32_0 : i32 to vector<64x64xi32>
    %5 = arith.shrsi %1, %4 : vector<64x64xi32>
    %6 = arith.cmpi eq, %3, %5 : vector<64x64xi32>
    %c7_i32 = arith.constant 7 : i32
    %7 = vector.broadcast %c7_i32 : i32 to vector<64x64xi32>
    %8 = arith.andi %1, %7 : vector<64x64xi32>
    %c5_i32 = arith.constant 5 : i32
    %9 = vector.broadcast %c5_i32 : i32 to vector<64x64xi32>
    %10 = arith.cmpi slt, %8, %9 : vector<64x64xi32>
    %11 = arith.andi %6, %10 : vector<64x64xi1>
    %c0 = arith.constant 0 : index
    %c0_1 = arith.constant 0 : index
    %12 = vector.load %arg1[%c0, %c0_1] : memref<8x32xf32, #tpu.memory_space<vmem>>, vector<8x32xf32>
    %13 = tpu.concatenate %12, %12 in 0 : vector<8x32xf32>, vector<8x32xf32> -> vector<16x32xf32>
    %c0_2 = arith.constant 0 : index
    %c0_3 = arith.constant 0 : index
    %14 = vector.load %arg0[%c0_2, %c0_3] : memref<16x192xf32, #tpu.memory_space<vmem>>, vector<16x192xf32>
    %15 = arith.truncf %14 : vector<16x192xf32> to vector<16x192xbf16>
    %c0_4 = arith.constant 0 : index
    %c0_5 = arith.constant 0 : index
    %16 = vector.load %arg2[%c0_4, %c0_5] : memref<192x32xbf16, #tpu.memory_space<vmem>>, vector<192x32xbf16>
    %cst = arith.constant dense<0.000000e+00> : vector<16x32xf32>
    %17 = tpu.matmul %15, %16, %cst {dimension_numbers = #tpu.dot_dimension_numbers<[1], [0], [0], [1], [0, 0, 1, 1], [], []>} : vector<16x192xbf16>, vector<192x32xbf16>, vector<16x32xf32> -> vector<16x32xf32>
    %18 = arith.addf %17, %13 : vector<16x32xf32>
    %c0_6 = arith.constant 0 : index
    %c0_7 = arith.constant 0 : index
    %19 = vector.load %arg3[%c0_6, %c0_7] : memref<2x32xf32, #tpu.memory_space<vmem>>, vector<1x32xf32>
    %c0_8 = arith.constant 0 : index
    %c0_9 = arith.constant 0 : index
    %20 = vector.load %arg4[%c0_8, %c0_9] : memref<2x32xf32, #tpu.memory_space<vmem>>, vector<1x32xf32>
    %cst_10 = arith.constant dense<0.000000e+00> : vector<16xf32>
    %21 = vector.multi_reduction <add>, %18, %cst_10 [1] : vector<16x32xf32> to vector<16xf32>
    %22 = vector.shape_cast %21 : vector<16xf32> to vector<16x1xf32>
    %23 = arith.mulf %18, %18 : vector<16x32xf32>
    %cst_11 = arith.constant dense<0.000000e+00> : vector<16xf32>
    %24 = vector.multi_reduction <add>, %23, %cst_11 [1] : vector<16x32xf32> to vector<16xf32>
    %25 = vector.shape_cast %24 : vector<16xf32> to vector<16x1xf32>
    %cst_12 = arith.constant 3.125000e-02 : f32
    %26 = vector.broadcast %cst_12 : f32 to vector<16x1xf32>
    %27 = arith.mulf %22, %26 : vector<16x1xf32>
    %cst_13 = arith.constant 3.125000e-02 : f32
    %28 = vector.broadcast %cst_13 : f32 to vector<16x1xf32>
    %29 = arith.mulf %25, %28 : vector<16x1xf32>
    %30 = arith.mulf %27, %27 : vector<16x1xf32>
    %31 = arith.subf %29, %30 : vector<16x1xf32>
    %32 = vector.broadcast %27 : vector<16x1xf32> to vector<16x32xf32>
    %33 = arith.subf %18, %32 : vector<16x32xf32>
    %cst_14 = arith.constant 9.99999997E-7 : f32
    %34 = vector.broadcast %cst_14 : f32 to vector<16x1xf32>
    %35 = arith.addf %31, %34 : vector<16x1xf32>
    %36 = math.rsqrt %35 : vector<16x1xf32>
    %37 = vector.broadcast %36 : vector<16x1xf32> to vector<16x32xf32>
    %38 = arith.mulf %33, %37 : vector<16x32xf32>
    %39 = vector.broadcast %19 : vector<1x32xf32> to vector<16x32xf32>
    %40 = arith.mulf %38, %39 : vector<16x32xf32>
    %41 = vector.broadcast %20 : vector<1x32xf32> to vector<16x32xf32>
    %42 = arith.addf %40, %41 : vector<16x32xf32>
    %43 = arith.truncf %42 : vector<16x32xf32> to vector<16x32xbf16>
    %c0_15 = arith.constant 0 : index
    %c0_16 = arith.constant 0 : index
    %44 = vector.load %arg5[%c0_15, %c0_16] : memref<64x96xbf16, #tpu.memory_space<vmem>>, vector<32x96xbf16>
    %cst_17 = arith.constant dense<0.000000e+00> : vector<16x96xf32>
    %45 = tpu.matmul %43, %44, %cst_17 {dimension_numbers = #tpu.dot_dimension_numbers<[1], [0], [0], [1], [0, 0, 1, 1], [], []>} : vector<16x32xbf16>, vector<32x96xbf16>, vector<16x96xf32> -> vector<16x96xf32>
    %46 = vector.extract_strided_slice %45 {offsets = [0, 0], sizes = [16, 8], strides = [1, 1]} : vector<16x96xf32> to vector<16x8xf32>
    %47 = vector.extract_strided_slice %45 {offsets = [0, 8], sizes = [16, 8], strides = [1, 1]} : vector<16x96xf32> to vector<16x8xf32>
    %48 = vector.extract_strided_slice %45 {offsets = [0, 16], sizes = [16, 8], strides = [1, 1]} : vector<16x96xf32> to vector<16x8xf32>
    %49 = vector.extract_strided_slice %45 {offsets = [0, 24], sizes = [16, 8], strides = [1, 1]} : vector<16x96xf32> to vector<16x8xf32>
    %50 = tpu.concatenate %46, %47, %48, %49 in 0 : vector<16x8xf32>, vector<16x8xf32>, vector<16x8xf32>, vector<16x8xf32> -> vector<64x8xf32>
    %51 = vector.extract_strided_slice %45 {offsets = [0, 32], sizes = [16, 8], strides = [1, 1]} : vector<16x96xf32> to vector<16x8xf32>
    %52 = vector.extract_strided_slice %45 {offsets = [0, 40], sizes = [16, 8], strides = [1, 1]} : vector<16x96xf32> to vector<16x8xf32>
    %53 = vector.extract_strided_slice %45 {offsets = [0, 48], sizes = [16, 8], strides = [1, 1]} : vector<16x96xf32> to vector<16x8xf32>
    %54 = vector.extract_strided_slice %45 {offsets = [0, 56], sizes = [16, 8], strides = [1, 1]} : vector<16x96xf32> to vector<16x8xf32>
    %55 = tpu.concatenate %51, %52, %53, %54 in 0 : vector<16x8xf32>, vector<16x8xf32>, vector<16x8xf32>, vector<16x8xf32> -> vector<64x8xf32>
    %56 = vector.extract_strided_slice %45 {offsets = [0, 64], sizes = [16, 8], strides = [1, 1]} : vector<16x96xf32> to vector<16x8xf32>
    %57 = vector.extract_strided_slice %45 {offsets = [0, 72], sizes = [16, 8], strides = [1, 1]} : vector<16x96xf32> to vector<16x8xf32>
    %58 = vector.extract_strided_slice %45 {offsets = [0, 80], sizes = [16, 8], strides = [1, 1]} : vector<16x96xf32> to vector<16x8xf32>
    %59 = vector.extract_strided_slice %45 {offsets = [0, 88], sizes = [16, 8], strides = [1, 1]} : vector<16x96xf32> to vector<16x8xf32>
    %60 = tpu.concatenate %56, %57, %58, %59 in 0 : vector<16x8xf32>, vector<16x8xf32>, vector<16x8xf32>, vector<16x8xf32> -> vector<64x8xf32>
    %61 = arith.truncf %50 : vector<64x8xf32> to vector<64x8xbf16>
    %62 = arith.truncf %55 : vector<64x8xf32> to vector<64x8xbf16>
    %cst_18 = arith.constant dense<0.000000e+00> : vector<64x64xf32>
    %63 = tpu.matmul %61, %62, %cst_18 {dimension_numbers = #tpu.dot_dimension_numbers<[1], [1], [0], [0], [0, 0, 1, 0], [], []>} : vector<64x8xbf16>, vector<64x8xbf16>, vector<64x64xf32> -> vector<64x64xf32>
    %cst_19 = arith.constant -1.000000e+30 : f32
    %64 = vector.broadcast %cst_19 : f32 to vector<64x64xf32>
    %65 = arith.select %11, %63, %64 : vector<64x64xi1>, vector<64x64xf32>
    %cst_20 = arith.constant dense<0xFF800000> : vector<64xf32>
    %66 = vector.multi_reduction <maximumf>, %65, %cst_20 [1] : vector<64x64xf32> to vector<64xf32>
    %67 = vector.shape_cast %66 : vector<64xf32> to vector<64x1xf32>
    %68 = vector.broadcast %67 : vector<64x1xf32> to vector<64x64xf32>
    %69 = arith.subf %65, %68 : vector<64x64xf32>
    %70 = math.exp %69 : vector<64x64xf32>
    %cst_21 = arith.constant dense<0.000000e+00> : vector<64xf32>
    %71 = vector.multi_reduction <add>, %70, %cst_21 [1] : vector<64x64xf32> to vector<64xf32>
    %72 = vector.shape_cast %71 : vector<64xf32> to vector<64x1xf32>
    %73 = tpu.reciprocal %72 {approx = true} : vector<64x1xf32> -> vector<64x1xf32>
    %74 = vector.broadcast %73 : vector<64x1xf32> to vector<64x64xf32>
    %75 = arith.mulf %70, %74 : vector<64x64xf32>
    %76 = arith.truncf %75 : vector<64x64xf32> to vector<64x64xbf16>
    %77 = arith.truncf %60 : vector<64x8xf32> to vector<64x8xbf16>
    %cst_22 = arith.constant dense<0.000000e+00> : vector<64x8xf32>
    %78 = tpu.matmul %76, %77, %cst_22 {dimension_numbers = #tpu.dot_dimension_numbers<[1], [0], [0], [1], [0, 0, 1, 1], [], []>} : vector<64x64xbf16>, vector<64x8xbf16>, vector<64x8xf32> -> vector<64x8xf32>
    %79 = vector.extract_strided_slice %78 {offsets = [0, 0], sizes = [16, 8], strides = [1, 1]} : vector<64x8xf32> to vector<16x8xf32>
    %80 = vector.extract_strided_slice %78 {offsets = [16, 0], sizes = [16, 8], strides = [1, 1]} : vector<64x8xf32> to vector<16x8xf32>
    %81 = vector.extract_strided_slice %78 {offsets = [32, 0], sizes = [16, 8], strides = [1, 1]} : vector<64x8xf32> to vector<16x8xf32>
    %82 = vector.extract_strided_slice %78 {offsets = [48, 0], sizes = [16, 8], strides = [1, 1]} : vector<64x8xf32> to vector<16x8xf32>
    %83 = tpu.concatenate %79, %80, %81, %82 in 1 : vector<16x8xf32>, vector<16x8xf32>, vector<16x8xf32>, vector<16x8xf32> -> vector<16x32xf32>
    %84 = arith.truncf %83 : vector<16x32xf32> to vector<16x32xbf16>
    %c0_23 = arith.constant 0 : index
    %c0_24 = arith.constant 0 : index
    %85 = vector.load %arg6[%c0_23, %c0_24] : memref<64x32xbf16, #tpu.memory_space<vmem>>, vector<32x32xbf16>
    %cst_25 = arith.constant dense<0.000000e+00> : vector<16x32xf32>
    %86 = tpu.matmul %84, %85, %cst_25 {dimension_numbers = #tpu.dot_dimension_numbers<[1], [0], [0], [1], [0, 0, 1, 1], [], []>} : vector<16x32xbf16>, vector<32x32xbf16>, vector<16x32xf32> -> vector<16x32xf32>
    %87 = arith.addf %18, %86 : vector<16x32xf32>
    %c0_26 = arith.constant 0 : index
    %c0_27 = arith.constant 0 : index
    %88 = vector.load %arg7[%c0_26, %c0_27] : memref<2x32xf32, #tpu.memory_space<vmem>>, vector<1x32xf32>
    %c0_28 = arith.constant 0 : index
    %c0_29 = arith.constant 0 : index
    %89 = vector.load %arg8[%c0_28, %c0_29] : memref<2x32xf32, #tpu.memory_space<vmem>>, vector<1x32xf32>
    %cst_30 = arith.constant dense<0.000000e+00> : vector<16xf32>
    %90 = vector.multi_reduction <add>, %87, %cst_30 [1] : vector<16x32xf32> to vector<16xf32>
    %91 = vector.shape_cast %90 : vector<16xf32> to vector<16x1xf32>
    %92 = arith.mulf %87, %87 : vector<16x32xf32>
    %cst_31 = arith.constant dense<0.000000e+00> : vector<16xf32>
    %93 = vector.multi_reduction <add>, %92, %cst_31 [1] : vector<16x32xf32> to vector<16xf32>
    %94 = vector.shape_cast %93 : vector<16xf32> to vector<16x1xf32>
    %cst_32 = arith.constant 3.125000e-02 : f32
    %95 = vector.broadcast %cst_32 : f32 to vector<16x1xf32>
    %96 = arith.mulf %91, %95 : vector<16x1xf32>
    %cst_33 = arith.constant 3.125000e-02 : f32
    %97 = vector.broadcast %cst_33 : f32 to vector<16x1xf32>
    %98 = arith.mulf %94, %97 : vector<16x1xf32>
    %99 = arith.mulf %96, %96 : vector<16x1xf32>
    %100 = arith.subf %98, %99 : vector<16x1xf32>
    %101 = vector.broadcast %96 : vector<16x1xf32> to vector<16x32xf32>
    %102 = arith.subf %87, %101 : vector<16x32xf32>
    %cst_34 = arith.constant 9.99999997E-7 : f32
    %103 = vector.broadcast %cst_34 : f32 to vector<16x1xf32>
    %104 = arith.addf %100, %103 : vector<16x1xf32>
    %105 = math.rsqrt %104 : vector<16x1xf32>
    %106 = vector.broadcast %105 : vector<16x1xf32> to vector<16x32xf32>
    %107 = arith.mulf %102, %106 : vector<16x32xf32>
    %108 = vector.broadcast %88 : vector<1x32xf32> to vector<16x32xf32>
    %109 = arith.mulf %107, %108 : vector<16x32xf32>
    %110 = vector.broadcast %89 : vector<1x32xf32> to vector<16x32xf32>
    %111 = arith.addf %109, %110 : vector<16x32xf32>
    %112 = arith.truncf %111 : vector<16x32xf32> to vector<16x32xbf16>
    %c0_35 = arith.constant 0 : index
    %c0_36 = arith.constant 0 : index
    %113 = vector.load %arg9[%c0_35, %c0_36] : memref<64x128xbf16, #tpu.memory_space<vmem>>, vector<32x128xbf16>
    %cst_37 = arith.constant dense<0.000000e+00> : vector<16x128xf32>
    %114 = tpu.matmul %112, %113, %cst_37 {dimension_numbers = #tpu.dot_dimension_numbers<[1], [0], [0], [1], [0, 0, 1, 1], [], []>} : vector<16x32xbf16>, vector<32x128xbf16>, vector<16x128xf32> -> vector<16x128xf32>
    %c0_38 = arith.constant 0 : index
    %c0_39 = arith.constant 0 : index
    %115 = vector.load %arg10[%c0_38, %c0_39] : memref<2x128xf32, #tpu.memory_space<vmem>>, vector<1x128xf32>
    %116 = vector.broadcast %115 : vector<1x128xf32> to vector<16x128xf32>
    %117 = arith.addf %114, %116 : vector<16x128xf32>
    %cst_40 = arith.constant 5.000000e-01 : f32
    %118 = vector.broadcast %cst_40 : f32 to vector<16x128xf32>
    %119 = arith.mulf %118, %117 : vector<16x128xf32>
    %cst_41 = arith.constant 0.707106769 : f32
    %120 = vector.broadcast %cst_41 : f32 to vector<16x128xf32>
    %121 = arith.mulf %117, %120 : vector<16x128xf32>
    %122 = math.erf %121 : vector<16x128xf32>
    %cst_42 = arith.constant 1.000000e+00 : f32
    %123 = vector.broadcast %cst_42 : f32 to vector<16x128xf32>
    %124 = arith.addf %123, %122 : vector<16x128xf32>
    %125 = arith.mulf %119, %124 : vector<16x128xf32>
    %126 = arith.truncf %125 : vector<16x128xf32> to vector<16x128xbf16>
    %c0_43 = arith.constant 0 : index
    %c0_44 = arith.constant 0 : index
    %127 = vector.load %arg11[%c0_43, %c0_44] : memref<256x32xbf16, #tpu.memory_space<vmem>>, vector<128x32xbf16>
    %cst_45 = arith.constant dense<0.000000e+00> : vector<16x32xf32>
    %128 = tpu.matmul %126, %127, %cst_45 {dimension_numbers = #tpu.dot_dimension_numbers<[1], [0], [0], [1], [0, 0, 1, 1], [], []>} : vector<16x128xbf16>, vector<128x32xbf16>, vector<16x32xf32> -> vector<16x32xf32>
    %129 = arith.addf %87, %128 : vector<16x32xf32>
    %c0_46 = arith.constant 0 : index
    %c0_47 = arith.constant 0 : index
    %130 = vector.load %arg12[%c0_46, %c0_47] : memref<2x32xf32, #tpu.memory_space<vmem>>, vector<1x32xf32>
    %131 = vector.broadcast %130 : vector<1x32xf32> to vector<16x32xf32>
    %132 = arith.addf %129, %131 : vector<16x32xf32>
    %c1 = arith.constant 1 : index
    %c0_48 = arith.constant 0 : index
    %133 = vector.load %arg3[%c1, %c0_48] : memref<2x32xf32, #tpu.memory_space<vmem>>, vector<1x32xf32>
    %c1_49 = arith.constant 1 : index
    %c0_50 = arith.constant 0 : index
    %134 = vector.load %arg4[%c1_49, %c0_50] : memref<2x32xf32, #tpu.memory_space<vmem>>, vector<1x32xf32>
    %cst_51 = arith.constant dense<0.000000e+00> : vector<16xf32>
    %135 = vector.multi_reduction <add>, %132, %cst_51 [1] : vector<16x32xf32> to vector<16xf32>
    %136 = vector.shape_cast %135 : vector<16xf32> to vector<16x1xf32>
    %137 = arith.mulf %132, %132 : vector<16x32xf32>
    %cst_52 = arith.constant dense<0.000000e+00> : vector<16xf32>
    %138 = vector.multi_reduction <add>, %137, %cst_52 [1] : vector<16x32xf32> to vector<16xf32>
    %139 = vector.shape_cast %138 : vector<16xf32> to vector<16x1xf32>
    %cst_53 = arith.constant 3.125000e-02 : f32
    %140 = vector.broadcast %cst_53 : f32 to vector<16x1xf32>
    %141 = arith.mulf %136, %140 : vector<16x1xf32>
    %cst_54 = arith.constant 3.125000e-02 : f32
    %142 = vector.broadcast %cst_54 : f32 to vector<16x1xf32>
    %143 = arith.mulf %139, %142 : vector<16x1xf32>
    %144 = arith.mulf %141, %141 : vector<16x1xf32>
    %145 = arith.subf %143, %144 : vector<16x1xf32>
    %146 = vector.broadcast %141 : vector<16x1xf32> to vector<16x32xf32>
    %147 = arith.subf %132, %146 : vector<16x32xf32>
    %cst_55 = arith.constant 9.99999997E-7 : f32
    %148 = vector.broadcast %cst_55 : f32 to vector<16x1xf32>
    %149 = arith.addf %145, %148 : vector<16x1xf32>
    %150 = math.rsqrt %149 : vector<16x1xf32>
    %151 = vector.broadcast %150 : vector<16x1xf32> to vector<16x32xf32>
    %152 = arith.mulf %147, %151 : vector<16x32xf32>
    %153 = vector.broadcast %133 : vector<1x32xf32> to vector<16x32xf32>
    %154 = arith.mulf %152, %153 : vector<16x32xf32>
    %155 = vector.broadcast %134 : vector<1x32xf32> to vector<16x32xf32>
    %156 = arith.addf %154, %155 : vector<16x32xf32>
    %157 = arith.truncf %156 : vector<16x32xf32> to vector<16x32xbf16>
    %c32 = arith.constant 32 : index
    %c0_56 = arith.constant 0 : index
    %158 = vector.load %arg5[%c32, %c0_56] : memref<64x96xbf16, #tpu.memory_space<vmem>>, vector<32x96xbf16>
    %cst_57 = arith.constant dense<0.000000e+00> : vector<16x96xf32>
    %159 = tpu.matmul %157, %158, %cst_57 {dimension_numbers = #tpu.dot_dimension_numbers<[1], [0], [0], [1], [0, 0, 1, 1], [], []>} : vector<16x32xbf16>, vector<32x96xbf16>, vector<16x96xf32> -> vector<16x96xf32>
    %160 = vector.extract_strided_slice %159 {offsets = [0, 0], sizes = [16, 8], strides = [1, 1]} : vector<16x96xf32> to vector<16x8xf32>
    %161 = vector.extract_strided_slice %159 {offsets = [0, 8], sizes = [16, 8], strides = [1, 1]} : vector<16x96xf32> to vector<16x8xf32>
    %162 = vector.extract_strided_slice %159 {offsets = [0, 16], sizes = [16, 8], strides = [1, 1]} : vector<16x96xf32> to vector<16x8xf32>
    %163 = vector.extract_strided_slice %159 {offsets = [0, 24], sizes = [16, 8], strides = [1, 1]} : vector<16x96xf32> to vector<16x8xf32>
    %164 = tpu.concatenate %160, %161, %162, %163 in 0 : vector<16x8xf32>, vector<16x8xf32>, vector<16x8xf32>, vector<16x8xf32> -> vector<64x8xf32>
    %165 = vector.extract_strided_slice %159 {offsets = [0, 32], sizes = [16, 8], strides = [1, 1]} : vector<16x96xf32> to vector<16x8xf32>
    %166 = vector.extract_strided_slice %159 {offsets = [0, 40], sizes = [16, 8], strides = [1, 1]} : vector<16x96xf32> to vector<16x8xf32>
    %167 = vector.extract_strided_slice %159 {offsets = [0, 48], sizes = [16, 8], strides = [1, 1]} : vector<16x96xf32> to vector<16x8xf32>
    %168 = vector.extract_strided_slice %159 {offsets = [0, 56], sizes = [16, 8], strides = [1, 1]} : vector<16x96xf32> to vector<16x8xf32>
    %169 = tpu.concatenate %165, %166, %167, %168 in 0 : vector<16x8xf32>, vector<16x8xf32>, vector<16x8xf32>, vector<16x8xf32> -> vector<64x8xf32>
    %170 = vector.extract_strided_slice %159 {offsets = [0, 64], sizes = [16, 8], strides = [1, 1]} : vector<16x96xf32> to vector<16x8xf32>
    %171 = vector.extract_strided_slice %159 {offsets = [0, 72], sizes = [16, 8], strides = [1, 1]} : vector<16x96xf32> to vector<16x8xf32>
    %172 = vector.extract_strided_slice %159 {offsets = [0, 80], sizes = [16, 8], strides = [1, 1]} : vector<16x96xf32> to vector<16x8xf32>
    %173 = vector.extract_strided_slice %159 {offsets = [0, 88], sizes = [16, 8], strides = [1, 1]} : vector<16x96xf32> to vector<16x8xf32>
    %174 = tpu.concatenate %170, %171, %172, %173 in 0 : vector<16x8xf32>, vector<16x8xf32>, vector<16x8xf32>, vector<16x8xf32> -> vector<64x8xf32>
    %175 = arith.truncf %164 : vector<64x8xf32> to vector<64x8xbf16>
    %176 = arith.truncf %169 : vector<64x8xf32> to vector<64x8xbf16>
    %cst_58 = arith.constant dense<0.000000e+00> : vector<64x64xf32>
    %177 = tpu.matmul %175, %176, %cst_58 {dimension_numbers = #tpu.dot_dimension_numbers<[1], [1], [0], [0], [0, 0, 1, 0], [], []>} : vector<64x8xbf16>, vector<64x8xbf16>, vector<64x64xf32> -> vector<64x64xf32>
    %cst_59 = arith.constant -1.000000e+30 : f32
    %178 = vector.broadcast %cst_59 : f32 to vector<64x64xf32>
    %179 = arith.select %11, %177, %178 : vector<64x64xi1>, vector<64x64xf32>
    %cst_60 = arith.constant dense<0xFF800000> : vector<64xf32>
    %180 = vector.multi_reduction <maximumf>, %179, %cst_60 [1] : vector<64x64xf32> to vector<64xf32>
    %181 = vector.shape_cast %180 : vector<64xf32> to vector<64x1xf32>
    %182 = vector.broadcast %181 : vector<64x1xf32> to vector<64x64xf32>
    %183 = arith.subf %179, %182 : vector<64x64xf32>
    %184 = math.exp %183 : vector<64x64xf32>
    %cst_61 = arith.constant dense<0.000000e+00> : vector<64xf32>
    %185 = vector.multi_reduction <add>, %184, %cst_61 [1] : vector<64x64xf32> to vector<64xf32>
    %186 = vector.shape_cast %185 : vector<64xf32> to vector<64x1xf32>
    %187 = tpu.reciprocal %186 {approx = true} : vector<64x1xf32> -> vector<64x1xf32>
    %188 = vector.broadcast %187 : vector<64x1xf32> to vector<64x64xf32>
    %189 = arith.mulf %184, %188 : vector<64x64xf32>
    %190 = arith.truncf %189 : vector<64x64xf32> to vector<64x64xbf16>
    %191 = arith.truncf %174 : vector<64x8xf32> to vector<64x8xbf16>
    %cst_62 = arith.constant dense<0.000000e+00> : vector<64x8xf32>
    %192 = tpu.matmul %190, %191, %cst_62 {dimension_numbers = #tpu.dot_dimension_numbers<[1], [0], [0], [1], [0, 0, 1, 1], [], []>} : vector<64x64xbf16>, vector<64x8xbf16>, vector<64x8xf32> -> vector<64x8xf32>
    %193 = vector.extract_strided_slice %192 {offsets = [0, 0], sizes = [16, 8], strides = [1, 1]} : vector<64x8xf32> to vector<16x8xf32>
    %194 = vector.extract_strided_slice %192 {offsets = [16, 0], sizes = [16, 8], strides = [1, 1]} : vector<64x8xf32> to vector<16x8xf32>
    %195 = vector.extract_strided_slice %192 {offsets = [32, 0], sizes = [16, 8], strides = [1, 1]} : vector<64x8xf32> to vector<16x8xf32>
    %196 = vector.extract_strided_slice %192 {offsets = [48, 0], sizes = [16, 8], strides = [1, 1]} : vector<64x8xf32> to vector<16x8xf32>
    %197 = tpu.concatenate %193, %194, %195, %196 in 1 : vector<16x8xf32>, vector<16x8xf32>, vector<16x8xf32>, vector<16x8xf32> -> vector<16x32xf32>
    %198 = arith.truncf %197 : vector<16x32xf32> to vector<16x32xbf16>
    %c32_63 = arith.constant 32 : index
    %c0_64 = arith.constant 0 : index
    %199 = vector.load %arg6[%c32_63, %c0_64] : memref<64x32xbf16, #tpu.memory_space<vmem>>, vector<32x32xbf16>
    %cst_65 = arith.constant dense<0.000000e+00> : vector<16x32xf32>
    %200 = tpu.matmul %198, %199, %cst_65 {dimension_numbers = #tpu.dot_dimension_numbers<[1], [0], [0], [1], [0, 0, 1, 1], [], []>} : vector<16x32xbf16>, vector<32x32xbf16>, vector<16x32xf32> -> vector<16x32xf32>
    %201 = arith.addf %132, %200 : vector<16x32xf32>
    %c1_66 = arith.constant 1 : index
    %c0_67 = arith.constant 0 : index
    %202 = vector.load %arg7[%c1_66, %c0_67] : memref<2x32xf32, #tpu.memory_space<vmem>>, vector<1x32xf32>
    %c1_68 = arith.constant 1 : index
    %c0_69 = arith.constant 0 : index
    %203 = vector.load %arg8[%c1_68, %c0_69] : memref<2x32xf32, #tpu.memory_space<vmem>>, vector<1x32xf32>
    %cst_70 = arith.constant dense<0.000000e+00> : vector<16xf32>
    %204 = vector.multi_reduction <add>, %201, %cst_70 [1] : vector<16x32xf32> to vector<16xf32>
    %205 = vector.shape_cast %204 : vector<16xf32> to vector<16x1xf32>
    %206 = arith.mulf %201, %201 : vector<16x32xf32>
    %cst_71 = arith.constant dense<0.000000e+00> : vector<16xf32>
    %207 = vector.multi_reduction <add>, %206, %cst_71 [1] : vector<16x32xf32> to vector<16xf32>
    %208 = vector.shape_cast %207 : vector<16xf32> to vector<16x1xf32>
    %cst_72 = arith.constant 3.125000e-02 : f32
    %209 = vector.broadcast %cst_72 : f32 to vector<16x1xf32>
    %210 = arith.mulf %205, %209 : vector<16x1xf32>
    %cst_73 = arith.constant 3.125000e-02 : f32
    %211 = vector.broadcast %cst_73 : f32 to vector<16x1xf32>
    %212 = arith.mulf %208, %211 : vector<16x1xf32>
    %213 = arith.mulf %210, %210 : vector<16x1xf32>
    %214 = arith.subf %212, %213 : vector<16x1xf32>
    %215 = vector.broadcast %210 : vector<16x1xf32> to vector<16x32xf32>
    %216 = arith.subf %201, %215 : vector<16x32xf32>
    %cst_74 = arith.constant 9.99999997E-7 : f32
    %217 = vector.broadcast %cst_74 : f32 to vector<16x1xf32>
    %218 = arith.addf %214, %217 : vector<16x1xf32>
    %219 = math.rsqrt %218 : vector<16x1xf32>
    %220 = vector.broadcast %219 : vector<16x1xf32> to vector<16x32xf32>
    %221 = arith.mulf %216, %220 : vector<16x32xf32>
    %222 = vector.broadcast %202 : vector<1x32xf32> to vector<16x32xf32>
    %223 = arith.mulf %221, %222 : vector<16x32xf32>
    %224 = vector.broadcast %203 : vector<1x32xf32> to vector<16x32xf32>
    %225 = arith.addf %223, %224 : vector<16x32xf32>
    %226 = arith.truncf %225 : vector<16x32xf32> to vector<16x32xbf16>
    %c32_75 = arith.constant 32 : index
    %c0_76 = arith.constant 0 : index
    %227 = vector.load %arg9[%c32_75, %c0_76] : memref<64x128xbf16, #tpu.memory_space<vmem>>, vector<32x128xbf16>
    %cst_77 = arith.constant dense<0.000000e+00> : vector<16x128xf32>
    %228 = tpu.matmul %226, %227, %cst_77 {dimension_numbers = #tpu.dot_dimension_numbers<[1], [0], [0], [1], [0, 0, 1, 1], [], []>} : vector<16x32xbf16>, vector<32x128xbf16>, vector<16x128xf32> -> vector<16x128xf32>
    %c1_78 = arith.constant 1 : index
    %c0_79 = arith.constant 0 : index
    %229 = vector.load %arg10[%c1_78, %c0_79] : memref<2x128xf32, #tpu.memory_space<vmem>>, vector<1x128xf32>
    %230 = vector.broadcast %229 : vector<1x128xf32> to vector<16x128xf32>
    %231 = arith.addf %228, %230 : vector<16x128xf32>
    %cst_80 = arith.constant 5.000000e-01 : f32
    %232 = vector.broadcast %cst_80 : f32 to vector<16x128xf32>
    %233 = arith.mulf %232, %231 : vector<16x128xf32>
    %cst_81 = arith.constant 0.707106769 : f32
    %234 = vector.broadcast %cst_81 : f32 to vector<16x128xf32>
    %235 = arith.mulf %231, %234 : vector<16x128xf32>
    %236 = math.erf %235 : vector<16x128xf32>
    %cst_82 = arith.constant 1.000000e+00 : f32
    %237 = vector.broadcast %cst_82 : f32 to vector<16x128xf32>
    %238 = arith.addf %237, %236 : vector<16x128xf32>
    %239 = arith.mulf %233, %238 : vector<16x128xf32>
    %240 = arith.truncf %239 : vector<16x128xf32> to vector<16x128xbf16>
    %c128 = arith.constant 128 : index
    %c0_83 = arith.constant 0 : index
    %241 = vector.load %arg11[%c128, %c0_83] : memref<256x32xbf16, #tpu.memory_space<vmem>>, vector<128x32xbf16>
    %cst_84 = arith.constant dense<0.000000e+00> : vector<16x32xf32>
    %242 = tpu.matmul %240, %241, %cst_84 {dimension_numbers = #tpu.dot_dimension_numbers<[1], [0], [0], [1], [0, 0, 1, 1], [], []>} : vector<16x128xbf16>, vector<128x32xbf16>, vector<16x32xf32> -> vector<16x32xf32>
    %243 = arith.addf %201, %242 : vector<16x32xf32>
    %c1_85 = arith.constant 1 : index
    %c0_86 = arith.constant 0 : index
    %244 = vector.load %arg12[%c1_85, %c0_86] : memref<2x32xf32, #tpu.memory_space<vmem>>, vector<1x32xf32>
    %245 = vector.broadcast %244 : vector<1x32xf32> to vector<16x32xf32>
    %246 = arith.addf %243, %245 : vector<16x32xf32>
    %c0_87 = arith.constant 0 : index
    %c0_88 = arith.constant 0 : index
    %247 = vector.load %arg13[%c0_87, %c0_88] : memref<1x32xf32, #tpu.memory_space<vmem>>, vector<1x32xf32>
    %c0_89 = arith.constant 0 : index
    %c0_90 = arith.constant 0 : index
    %248 = vector.load %arg14[%c0_89, %c0_90] : memref<1x32xf32, #tpu.memory_space<vmem>>, vector<1x32xf32>
    %cst_91 = arith.constant dense<0.000000e+00> : vector<16xf32>
    %249 = vector.multi_reduction <add>, %246, %cst_91 [1] : vector<16x32xf32> to vector<16xf32>
    %250 = vector.shape_cast %249 : vector<16xf32> to vector<16x1xf32>
    %251 = arith.mulf %246, %246 : vector<16x32xf32>
    %cst_92 = arith.constant dense<0.000000e+00> : vector<16xf32>
    %252 = vector.multi_reduction <add>, %251, %cst_92 [1] : vector<16x32xf32> to vector<16xf32>
    %253 = vector.shape_cast %252 : vector<16xf32> to vector<16x1xf32>
    %cst_93 = arith.constant 3.125000e-02 : f32
    %254 = vector.broadcast %cst_93 : f32 to vector<16x1xf32>
    %255 = arith.mulf %250, %254 : vector<16x1xf32>
    %cst_94 = arith.constant 3.125000e-02 : f32
    %256 = vector.broadcast %cst_94 : f32 to vector<16x1xf32>
    %257 = arith.mulf %253, %256 : vector<16x1xf32>
    %258 = arith.mulf %255, %255 : vector<16x1xf32>
    %259 = arith.subf %257, %258 : vector<16x1xf32>
    %260 = vector.broadcast %255 : vector<16x1xf32> to vector<16x32xf32>
    %261 = arith.subf %246, %260 : vector<16x32xf32>
    %cst_95 = arith.constant 9.99999997E-7 : f32
    %262 = vector.broadcast %cst_95 : f32 to vector<16x1xf32>
    %263 = arith.addf %259, %262 : vector<16x1xf32>
    %264 = math.rsqrt %263 : vector<16x1xf32>
    %265 = vector.broadcast %264 : vector<16x1xf32> to vector<16x32xf32>
    %266 = arith.mulf %261, %265 : vector<16x32xf32>
    %267 = vector.broadcast %247 : vector<1x32xf32> to vector<16x32xf32>
    %268 = arith.mulf %266, %267 : vector<16x32xf32>
    %269 = vector.broadcast %248 : vector<1x32xf32> to vector<16x32xf32>
    %270 = arith.addf %268, %269 : vector<16x32xf32>
    %271 = arith.truncf %270 : vector<16x32xf32> to vector<16x32xbf16>
    %c0_96 = arith.constant 0 : index
    %c0_97 = arith.constant 0 : index
    %272 = vector.load %arg15[%c0_96, %c0_97] : memref<32x64xbf16, #tpu.memory_space<vmem>>, vector<32x64xbf16>
    %cst_98 = arith.constant dense<0.000000e+00> : vector<16x64xf32>
    %273 = tpu.matmul %271, %272, %cst_98 {dimension_numbers = #tpu.dot_dimension_numbers<[1], [0], [0], [1], [0, 0, 1, 1], [], []>} : vector<16x32xbf16>, vector<32x64xbf16>, vector<16x64xf32> -> vector<16x64xf32>
    %c0_99 = arith.constant 0 : index
    %c0_100 = arith.constant 0 : index
    %274 = vector.load %arg16[%c0_99, %c0_100] : memref<1x64xf32, #tpu.memory_space<vmem>>, vector<1x64xf32>
    %275 = vector.broadcast %274 : vector<1x64xf32> to vector<16x64xf32>
    %276 = arith.addf %273, %275 : vector<16x64xf32>
    %cst_101 = arith.constant 5.000000e-01 : f32
    %277 = vector.broadcast %cst_101 : f32 to vector<16x64xf32>
    %278 = arith.mulf %277, %276 : vector<16x64xf32>
    %cst_102 = arith.constant 0.707106769 : f32
    %279 = vector.broadcast %cst_102 : f32 to vector<16x64xf32>
    %280 = arith.mulf %276, %279 : vector<16x64xf32>
    %281 = math.erf %280 : vector<16x64xf32>
    %cst_103 = arith.constant 1.000000e+00 : f32
    %282 = vector.broadcast %cst_103 : f32 to vector<16x64xf32>
    %283 = arith.addf %282, %281 : vector<16x64xf32>
    %284 = arith.mulf %278, %283 : vector<16x64xf32>
    %285 = arith.truncf %284 : vector<16x64xf32> to vector<16x64xbf16>
    %c0_104 = arith.constant 0 : index
    %c0_105 = arith.constant 0 : index
    %286 = vector.load %arg17[%c0_104, %c0_105] : memref<64x16xbf16, #tpu.memory_space<vmem>>, vector<64x16xbf16>
    %cst_106 = arith.constant dense<0.000000e+00> : vector<16x16xf32>
    %287 = tpu.matmul %285, %286, %cst_106 {dimension_numbers = #tpu.dot_dimension_numbers<[1], [0], [0], [1], [0, 0, 1, 1], [], []>} : vector<16x64xbf16>, vector<64x16xbf16>, vector<16x16xf32> -> vector<16x16xf32>
    %288 = arith.mulf %287, %287 : vector<16x16xf32>
    %cst_107 = arith.constant dense<0.000000e+00> : vector<16xf32>
    %289 = vector.multi_reduction <add>, %288, %cst_107 [1] : vector<16x16xf32> to vector<16xf32>
    %290 = vector.shape_cast %289 : vector<16xf32> to vector<16x1xf32>
    %291 = math.sqrt %290 : vector<16x1xf32>
    %cst_108 = arith.constant 9.99999996E-13 : f32
    %292 = vector.broadcast %cst_108 : f32 to vector<16x1xf32>
    %293 = arith.maximumf %291, %292 : vector<16x1xf32>
    %294 = vector.broadcast %293 : vector<16x1xf32> to vector<16x16xf32>
    %295 = arith.divf %287, %294 : vector<16x16xf32>
    %c0_109 = arith.constant 0 : index
    %c0_110 = arith.constant 0 : index
    %296 = vector.load %arg18[%c0_109, %c0_110] : memref<16x16xf32, #tpu.memory_space<vmem>>, vector<16x16xf32>
    tpu.vector_store %arg18[%c0_109, %c0_110], %295 {strides = array<i32>} : memref<16x16xf32, #tpu.memory_space<vmem>>, vector<16x16xf32>,
    return
  }
}

</mosaic_0001>

<bundles_post_ra>
// kernel: vit_forward.1
= control target key start
LH: loop header
LB: loop body
LE: loop exit
PB: predicated region body
PF: predicated region fallthrough
CT: control target
= control target key end

     0   :  { %v2544_v0 = vmov 0   ;;  %vm201_vm0 = vcmask 523264   ;;  %vm3329_vm1 = vcmask 261120   ;;  %v2545_v32 = vmov 0.0   ;;  %s2547_s30 = smov 112   ;;  %s2549_s19 = smov 120   ;;  %s3300_s2 = inlined_call_operand.vmem [shape: bf16[192,32], index: 2, kind: input, shape index: {}]   ;;  %s3301_s0 = inlined_call_operand.vmem [shape: f32[16,192], index: 0, kind: input, shape index: {}]   ;;  %s3302_s1 = inlined_call_operand.vmem [shape: f32[8,32], index: 1, kind: input, shape index: {}]   ;;  %s3303_s5 = inlined_call_operand.vmem [shape: bf16[64,96], index: 5, kind: input, shape index: {}]   ;;  %s3304_s3 = inlined_call_operand.vmem [shape: f32[2,32], index: 3, kind: input, shape index: {}, may-alias: {3,7}]   ;;  %s3305_s4 = inlined_call_operand.vmem [shape: f32[2,32], index: 4, kind: input, shape index: {}, may-alias: {4,8,12}]   ;;  %s3306_s6 = inlined_call_operand.vmem [shape: bf16[64,32], index: 6, kind: input, shape index: {}]   ;;  %s3307_s9 = inlined_call_operand.vmem [shape: bf16[64,128], index: 9, kind: input, shape index: {}]   ;;  %s3308_s11 = inlined_call_operand.vmem [shape: bf16[256,32], index: 11, kind: input, shape index: {}]   ;;  %s3309_s7 = inlined_call_operand.vmem [shape: f32[2,32], index: 7, kind: input, shape index: {}, may-alias: {3,7}]   ;;  %s3310_s8 = inlined_call_operand.vmem [shape: f32[2,32], index: 8, kind: input, shape index: {}, may-alias: {4,8,12}]   ;;  %s3311_s10 = inlined_call_operand.vmem [shape: f32[2,128], index: 10, kind: input, shape index: {}]   ;;  %s3312_s12 = inlined_call_operand.vmem [shape: f32[2,32], index: 12, kind: input, shape index: {}, may-alias: {4,8,12}]   ;;  %s3313_s15 = inlined_call_operand.vmem [shape: bf16[32,64], index: 15, kind: input, shape index: {}]   ;;  %s3314_s13 = inlined_call_operand.vmem [shape: f32[1,32], index: 13, kind: input, shape index: {}]   ;;  %s3315_s14 = inlined_call_operand.vmem [shape: f32[1,32], index: 14, kind: input, shape index: {}]   ;;  %s3316_s17 = inlined_call_operand.vmem [shape: bf16[64,16], index: 17, kind: input, shape index: {}]   ;;  %s3317_s16 = inlined_call_operand.vmem [shape: f32[1,64], index: 16, kind: input, shape index: {}]   ;;  %s3318_s18 = inlined_call_operand.vmem [shape: f32[16,16], index: 18, kind: output, shape index: {}]  }
   0x1   :  { %3331 = sst [smem:[#allocation2_spill]] %s3300_s2  ;;  %205 = vmatprep.subr.bf16.mxu0 %v2544_v0  ;;  %2143 = vmatprep.subr.bf16.mxu1 %v2545_v32  ;;  %v2406_v33 = vld [vmem:[%s3303_s5 + $0x8] sm:$0xff]   ;;  %vm2546_vm2 = vmmov 0   ;;  %v2407_v34 = vld [vmem:[%s3303_s5] sm:$0xff]   ;;  %vm388_vm3 = vcmask 64512   ;;  %s2548_s2 = smov 104  }
   0x2   :  { %3332 = sst [smem:[#allocation3_spill]] %s3301_s0  ;;  %2147 = vmatprep.mubr.msk.bf16.mxu1 %vm2546_vm2, %v2545_v32  ;;  %2144 = vmatpush3.bf16.msra.mxu1 %v2406_v33  ;;  %v1994_v52 = vld [vmem:[%s3304_s3] ss:$0 sm:$0xff]  ;;  %s2550_s0 = smov 96  }
   0x3   :  { %3333 = sst [smem:[#allocation4_spill]] %s3302_s1  ;;  %2145 = vmatprep.subr.bf16.mxu1 %v2545_v32  ;;  %v1995_v57 = vld [vmem:[%s3305_s4] ss:$0 sm:$0xff]  ;;  %s2551_s20 = smov 64  }
   0x4   :  { %s3334_s29 = sld [smem:[#allocation2_spill]]  ;;  %s2552_s1 = smov 8  }
   0x5   :  { %s3335_s23 = sld [smem:[#allocation3_spill]]  ;;  %s2553_s24 = smov 24  }
   0x6   :  { %s3336_s22 = sld [smem:[#allocation4_spill]]  ;;  %2146 = vmatpush3.bf16.msra.mxu1 %v2407_v34  ;;  %s3328_s25 = smov 16  }
   0xa   :  { %v2394_v1 = vld [vmem:[%s3334_s29 + $0x38] sm:$0xff]   ;;  %v2395_v2 = vld [vmem:[%s3334_s29 + $0x30] sm:$0xff]   ;;  %v2396_v3 = vld [vmem:[%s3334_s29 + $0x28] sm:$0xff]  }
   0xb   :  { %206 = vmatpush1.bf16.msra.mxu0 %v2394_v1  ;;  %v2397_v4 = vld [vmem:[%s3334_s29 + $0x20] sm:$0xff]   ;;  %v100_v5 = vld [vmem:[%s3335_s23 + $0x8] sm:$0xff]  ;;  %v102_v6 = vld [vmem:[%s3335_s23 + $0x18] sm:$0xff] }
   0xc   :  { %207 = vmatprep.subr.bf16.mxu0 %v2544_v0  ;;  %v104_v7 = vpack.c.bf16 %v102_v6, %v100_v5  ;;  %v2398_v8 = vld [vmem:[%s3334_s29 + $0x18] sm:$0xff]   ;;  %v2399_v9 = vld [vmem:[%s3334_s29 + $0x10] sm:$0xff]   ;;  %v2400_v10 = vld [vmem:[%s3334_s29 + $0x8] sm:$0xff]  }
   0xd   :  { %v2401_v11 = vld [vmem:[%s3334_s29] sm:$0xff]   ;;  %v2402_v12 = vld [vmem:[%s3334_s29 + $0x58] sm:$0xff]   ;;  %v2403_v13 = vld [vmem:[%s3334_s29 + $0x50] sm:$0xff]  }
   0xe   :  { %1993 = vmatprep.mubr.msk.bf16.mxu0 %vm201_vm0, %v104_v7  ;;  %v2404_v14 = vld [vmem:[%s3334_s29 + $0x48] sm:$0xff]   ;;  %v2405_v15 = vld [vmem:[%s3334_s29 + $0x40] sm:$0xff]   ;;  %v101_v17 = vld [vmem:[%s3335_s23 + $0x10] sm:$0xff] }
   0xf   :  { %208 = vmatpush1.bf16.msra.mxu0 %v2395_v2  ;;  %v99_v16 = vld [vmem:[%s3335_s23] sm:$0xff] }
  0x10   :  { %209 = vmatprep.subr.bf16.mxu0 %v2544_v0  ;;  %v103_v18 = vpack.c.bf16 %v101_v17, %v99_v16  ;;  %v98_v19 = vld [vmem:[%s3336_s22] sm:$0xff] }
  0x13   :  { %210 = vmatpush1.bf16.msra.mxu0 %v2396_v3 }
  0x14   :  { %211 = vmatprep.subr.bf16.mxu0 %v2544_v0 }
  0x17   :  { %212 = vmatpush1.bf16.msra.mxu0 %v2397_v4 }
  0x18   :  { %213 = vmatprep.subr.bf16.mxu0 %v2544_v0 }
  0x1b   :  { %214 = vmatpush1.bf16.msra.mxu0 %v2398_v8 }
  0x1c   :  { %215 = vmatprep.subr.bf16.mxu0 %v2544_v0 }
  0x1f   :  { %216 = vmatpush1.bf16.msra.mxu0 %v2399_v9 }
  0x20   :  { %217 = vmatprep.subr.bf16.mxu0 %v2544_v0 }
  0x23   :  { %218 = vmatpush1.bf16.msra.mxu0 %v2400_v10 }
  0x24   :  { %219 = vmatprep.subr.bf16.mxu0 %v2544_v0 }
  0x27   :  { %220 = vmatpush1.bf16.msra.mxu0 %v2401_v11 }
  0x28   :  { %229 = vmatprep.subr.bf16.mxu0 %v2544_v0 }
  0x2b   :  { %230 = vmatpush2.bf16.msra.mxu0 %v2402_v12 }
  0x2c   :  { %231 = vmatprep.subr.bf16.mxu0 %v2544_v0 }
  0x2f   :  { %232 = vmatpush2.bf16.msra.mxu0 %v2403_v13 }
  0x30   :  { %233 = vmatprep.subr.bf16.mxu0 %v2544_v0 }
  0x33   :  { %234 = vmatpush2.bf16.msra.mxu0 %v2404_v14 }
  0x34   :  { %235 = vmatprep.subr.bf16.mxu0 %v2544_v0 }
  0x37   :  { %236 = vmatpush2.bf16.msra.mxu0 %v2405_v15 }
  0x38   :  { %2183 = vmatprep.subr.bf16.mxu0 %v2545_v32 }
  0x3a   :  { %238 = vmatmul.mubr.bf16.vlgmr.msra.gmra.mxu0 %v103_v18 }
  0x3b   :  { %2187 = vmatprep.mubr.msk.bf16.mxu0 %vm2546_vm2, %v2545_v32 }
  0xfa   :  { %v239_v20 = vpop.f32.mrf.mxu0 }
  0xfb   :  { %v2702_v21 = vadd.f32 %v239_v20, %v98_v19 }
  0xfc   :  { %v241_v22 = vpop.f32.mrf.mxu0 }
  0xfd   :  { %v249_v23 = vsel %vm3329_vm1, %v2702_v21, 0.0  ;;  %v255_v24 = vmul.f32 %v2702_v21, %v2702_v21 }
  0xfe   :  { %v242_v25 = vpop.f32.mrf.mxu0  ;;  %250 = vadd.xlane.f32.xlu0 %v249_v23 }
  0xff   :  { %v2708_v26 = vadd.f32 %v242_v25, %v98_v19  ;;  %v257_v27 = vsel %vm3329_vm1, %v255_v24, 0.0  ;;  %v60_v25 = vlaneseq }
 0x100   :  { %v244_v28 = vpop.f32.mrf.mxu0  ;;  %258 = vadd.xlane.f32.xlu1 %v257_v27 }
 0x101   :  { %v252_v29 = vsel %vm3329_vm1, %v2708_v26, 0.0  ;;  %v256_v30 = vmul.f32 %v2708_v26, %v2708_v26  ;;  %v61_v27 = vshrl.u32 %v60_v25, 7 }
 0x102   :  { %253 = vadd.xlane.f32.xlu0 %v252_v29  ;;  %v70_v29 = vand.u32 127, %v60_v25 }
 0x103   :  { %v260_v31 = vsel %vm3329_vm1, %v256_v30, 0.0  ;;  %v63_v28 = vadd.s32 16, %v61_v27  ;;  %v71_v34 = vshra.s32 %v61_v27, 3 }
 0x104   :  { %261 = vadd.xlane.f32.xlu1 %v260_v31  ;;  %v79_v31 = vshra.s32 %v70_v29, 3  ;;  %v88_v33 = vand.u32 7, %v70_v29 }
 0x105   :  { %v73_v30 = vshra.s32 %v63_v28, 3 }
 0x106   :  { %vm2777_vm5 = vcmp.lt.s32.totalorder %v88_v33, 5  ;;  %vm2781_vm6 = vcmp.eq.s32.totalorder %v71_v34, %v79_v31 }
 0x107   :  { %vm2773_vm4 = vcmp.eq.s32.totalorder %v73_v30, %v79_v31  ;;  %vm3322_vm8 = vmand %vm2781_vm6, %vm2777_vm5 }
 0x108   :  { %vm3323_vm7 = vmand %vm2773_vm4, %vm2777_vm5 }
 0x187   :  { %v251_v35 = vpop.xlane.xlu0 %250 }
 0x188   :  { %v263_v36 = vmul.f32 0.03125, %v251_v35  ;;  %v62_v35 = vadd.s32 8, %v61_v27 }
 0x189   :  { %v259_v37 = vpop.xlane.xlu1 %258 }
 0x18a   :  { %v267_v38 = vmul.f32 %v263_v36, %v263_v36  ;;  %v265_v39 = vmul.f32 0.03125, %v259_v37  ;;  %v271_v49 = vsub.f32 %v2702_v21, %v263_v36 }
 0x18b   :  { %v254_v40 = vpop.xlane.xlu0 %253 }
 0x18c   :  { %v269_v41 = vsub.f32 %v265_v39, %v267_v38  ;;  %v264_v42 = vmul.f32 0.03125, %v254_v40  ;;  %v64_v38 = vadd.s32 24, %v61_v27  ;;  %v72_v40 = vshra.s32 %v62_v35, 3 }
 0x18d   :  { %v262_v43 = vpop.xlane.xlu1 %261 }
 0x18e   :  { %v273_v44 = vadd.f32 1e-06, %v269_v41  ;;  %v268_v45 = vmul.f32 %v264_v42, %v264_v42  ;;  %v266_v46 = vmul.f32 0.03125, %v262_v43  ;;  %v272_v53 = vsub.f32 %v2708_v26, %v264_v42 }
 0x18f   :  { %v65_v41 = vadd.s32 32, %v61_v27  ;;  %v74_v42 = vshra.s32 %v64_v38, 3  ;;  %v67_v43 = vadd.s32 48, %v61_v27  ;;  %vm2798_vm9 = vcmp.eq.s32.totalorder %v72_v40, %v79_v31 }
 0x190   :  { %2440 = vrsqrt.f32 %v273_v44  ;;  %v270_v47 = vsub.f32 %v266_v46, %v268_v45  ;;  %vm3321_vm11 = vmand %vm2798_vm9, %vm2777_vm5 }
 0x191   :  { %vm2808_vm10 = vcmp.eq.s32.totalorder %v74_v42, %v79_v31 }
 0x192   :  { %v274_v48 = vadd.f32 1e-06, %v270_v47  ;;  %v75_v47 = vshra.s32 %v65_v41, 3  ;;  %vm3324_vm13 = vmand %vm2808_vm10, %vm2777_vm5 }
 0x194   :  { %2442 = vrsqrt.f32 %v274_v48  ;;  %v66_v48 = vadd.s32 40, %v61_v27  ;;  %vm2817_vm12 = vcmp.eq.s32.totalorder %v75_v47, %v79_v31 }
 0x195   :  { %vm3325_vm15 = vmand %vm2817_vm12, %vm2777_vm5 }
 0x19d   :  { %v2441_v50 = vpop.eup %2440 }
 0x19e   :  { %v277_v51 = vmul.f32 %v2441_v50, %v271_v49 }
 0x1a0   :  { %v283_v56 = vmul.f32 %v1994_v52, %v277_v51 }
 0x1a1   :  { %v2443_v54 = vpop.eup %2442 }
 0x1a2   :  { %v278_v55 = vmul.f32 %v2443_v54, %v272_v53  ;;  %v289_v59 = vadd.f32 %v1995_v57, %v283_v56  ;;  %v77_v53 = vshra.s32 %v67_v43, 3  ;;  %v68_v54 = vadd.s32 56, %v61_v27 }
 0x1a4   :  { %v284_v58 = vmul.f32 %v1994_v52, %v278_v55  ;;  %vm2830_vm14 = vcmp.eq.s32.totalorder %v77_v53, %v79_v31 }
 0x1a6   :  { %v290_v60 = vadd.f32 %v1995_v57, %v284_v58  ;;  %v76_v58 = vshra.s32 %v66_v48, 3 }
 0x1a8   :  { %v291_v61 = vpack.c.bf16 %v290_v60, %v289_v59 }
 0x1aa   :  { %2148 = vmatmul.mubr.msk.bf16.vlgmr.msra.gmra.mxu1 %vm3329_vm1, %v291_v61 }
 0x26a   :  { %v345_v62 = vpop.f32.mrf.mxu1 }
 0x26c   :  { %v2149_v63 = vpop.f32.mrf.mxu1 }
 0x26e   :  { %v348_v0 = vpop.f32.mrf.mxu1 }
 0x26f   :  { %v2738_v1 = vpack.c.bf16 %v348_v0, %v345_v62  ;;  %v2339_v2 = vpack.i.bf16 %v348_v0, %v345_v62  ;;  %v78_v62 = vshra.s32 %v68_v54, 3 }
 0x270   :  { %v2150_v3 = vpop.f32.mrf.mxu1 }
 0x271   :  { %2340 = vrot.lane.b32.xlu1 %v2339_v2, %s2547_s30  ;;  %2335 = vrot.lane.b32.xlu0 %v2339_v2, %s2548_s2 }
 0x272   :  { %2159 = vmatprep.mubr.msk.bf16.mxu1 %vm388_vm3, %v2738_v1 }
 0x275   :  { %2345 = vrot.lane.b32.xlu1 %v2339_v2, %s2549_s19 }
 0x2e3   :  { %v2341_v4 = vpop.permute.xlu1 %2340  ;;  %v2336_v5 = vpop.permute.xlu0 %2335 }
 0x2e4   :  { %v2343_v6 = vunpack.i.h.bf16 %v2341_v4  ;;  %v2342_v7 = vunpack.i.l.bf16 %v2341_v4  ;;  %v2338_v8 = vunpack.i.h.bf16 %v2336_v5  ;;  %v2337_v9 = vunpack.i.l.bf16 %v2336_v5 }
 0x2e6   :  { %v2745_v10 = vpack.c.bf16 %v2343_v6, %v2342_v7  ;;  %v2747_v11 = vpack.c.bf16 %v2338_v8, %v2337_v9 }
 0x2e7   :  { %v2346_v12 = vpop.permute.xlu1 %2345 }
 0x2e8   :  { %v2348_v13 = vunpack.i.h.bf16 %v2346_v12  ;;  %v2347_v14 = vunpack.i.l.bf16 %v2346_v12  ;;  %384 = vrot.lane.b32.xlu0 %v2745_v10, %s2550_s0  ;;  %386 = vrot.lane.b32.xlu1 %v2747_v11, %s2550_s0 }
 0x2ea   :  { %v2753_v15 = vpack.c.bf16 %v2348_v13, %v2347_v14 }
 0x2ec   :  { %382 = vrot.lane.b32.xlu1 %v2753_v15, %s2550_s0  ;;  %380 = vrot.lane.b32.xlu0 %v2738_v1, %s2550_s0 }
 0x35a   :  { %v387_v16 = vpop.permute.xlu1 %386  ;;  %v385_v18 = vpop.permute.xlu0 %384 }
 0x35b   :  { %v411_v17 = vsel %vm388_vm3, %v387_v16, 0  ;;  %2315 = vmatprep.subr.msk.bf16.mxu1 %vm388_vm3, %v387_v16  ;;  %v408_v19 = vsel %vm388_vm3, %v385_v18, 0 }
 0x35c   :  { %2152 = vmatpush3.bf16.xpose.msra.mxu1 %v411_v17 }
 0x35d   :  { %2316 = vmatprep.subr.msk.bf16.mxu1 %vm388_vm3, %v385_v18 }
 0x35e   :  { %v383_v20 = vpop.permute.xlu1 %382  ;;  %v381_v23 = vpop.permute.xlu0 %380 }
 0x35f   :  { %v405_v22 = vsel %vm388_vm3, %v383_v20, 0  ;;  %v402_v24 = vsel %vm388_vm3, %v381_v23, 0 }
 0x364   :  { %2154 = vmatpush3.bf16.xpose.msra.mxu1 %v408_v19 }
 0x365   :  { %2317 = vmatprep.subr.msk.bf16.mxu1 %vm388_vm3, %v383_v20 }
 0x36c   :  { %2156 = vmatpush3.bf16.xpose.msra.mxu1 %v405_v22 }
 0x36d   :  { %2318 = vmatprep.subr.msk.bf16.mxu1 %vm388_vm3, %v381_v23 }
 0x374   :  { %2158 = vmatpush3.bf16.xpose.msra.mxu1 %v402_v24 }
 0x37b   :  { %2160 = vmatmul.mubr.msk.bf16.vlgmr.msra.gmra.mxu1 %vm388_vm3, %v2753_v15 }
 0x37c   :  { %2163 = vmatprep.mubr.msk.bf16.mxu1 %vm388_vm3, %v2745_v10 }
 0x383   :  { %2164 = vmatmul.mubr.msk.bf16.gmra.mxu1 %vm388_vm3, %v2747_v11 }
 0x43b   :  { %v2161_v44 = vpop.f32.mrf.mxu1 }
 0x43c   :  { %v480_v45 = vsel %vm3323_vm7, %v2161_v44, -1e+30  ;;  %vm2857_vm7 = vcmp.eq.s32.totalorder %v78_v62, %v79_v31 }
 0x43d   :  { %v447_v49 = vpop.f32.mrf.mxu1  ;;  %v492_v50 = vsel %vm201_vm0, %v480_v45, -inf }
 0x43e   :  { %v478_v51 = vsel %vm3322_vm8, %v447_v49, -1e+30  ;;  %493 = vmax.xlane.f32.xlu0 %v492_v50  ;;  %vm96_vm8 = vmand %vm2830_vm14, %vm2777_vm5 }
 0x43f   :  { %v2162_v55 = vpop.f32.mrf.mxu1  ;;  %v486_v56 = vsel %vm201_vm0, %v478_v51, -inf }
 0x440   :  { %487 = vmax.xlane.f32.xlu1 %v486_v56  ;;  %v481_v2 = vsel %vm3324_vm13, %v2162_v55, -1e+30 }
 0x441   :  { %v450_v59 = vpop.f32.mrf.mxu1  ;;  %v495_v8 = vsel %vm201_vm0, %v481_v2, -inf }
 0x442   :  { %v479_v60 = vsel %vm3321_vm11, %v450_v59, -1e+30  ;;  %vm2844_vm11 = vcmp.eq.s32.totalorder %v76_v58, %v79_v31 }
 0x443   :  { %v2165_v63 = vpop.f32.mrf.mxu1  ;;  %v489_v0 = vsel %vm201_vm0, %v479_v60, -inf  ;;  %vm3327_vm13 = vmand %vm2844_vm11, %vm2777_vm5 }
 0x444   :  { %490 = vmax.xlane.f32.xlu0 %v489_v0  ;;  %v484_v12 = vsel %vm96_vm8, %v2165_v63, -1e+30 }
 0x445   :  { %v463_v4 = vpop.f32.mrf.mxu1  ;;  %v504_v16 = vsel %vm201_vm0, %v484_v12, -inf }
 0x446   :  { %v482_v5 = vsel %vm3325_vm15, %v463_v4, -1e+30  ;;  %vm3326_vm15 = vmand %vm2857_vm7, %vm2777_vm5 }
 0x447   :  { %v2166_v7 = vpop.f32.mrf.mxu1  ;;  %v498_v9 = vsel %vm201_vm0, %v482_v5, -inf }
 0x448   :  { %496 = vmax.xlane.f32.xlu0 %v495_v8  ;;  %499 = vmax.xlane.f32.xlu1 %v498_v9  ;;  %v485_v18 = vsel %vm3326_vm15, %v2166_v7, -1e+30  ;;  %vm693_vm15 = vcmask 130048  }
 0x449   :  { %v466_v13 = vpop.f32.mrf.mxu1  ;;  %v507_v19 = vsel %vm201_vm0, %v485_v18, -inf }
 0x44a   :  { %v483_v14 = vsel %vm3327_vm13, %v466_v13, -1e+30  ;;  %vm3330_vm13 = vcmask 195584  }
 0x44b   :  { %v501_v17 = vsel %vm201_vm0, %v483_v14, -inf }
 0x44c   :  { %505 = vmax.xlane.f32.xlu1 %v504_v16  ;;  %502 = vmax.xlane.f32.xlu0 %v501_v17 }
 0x450   :  { %508 = vmax.xlane.f32.xlu0 %v507_v19 }
 0x45d   :  { %584 = vrot.lane.b32.xlu1 %v2747_v11, %s2551_s20 }
 0x4c7   :  { %v494_v20 = vpop.xlane.xlu0 %493 }
 0x4c8   :  { %v512_v22 = vsub.f32 %v480_v45, %v494_v20 }
 0x4c9   :  { %v488_v23 = vpop.xlane.xlu1 %487 }
 0x4ca   :  { %v522_v24 = vmul.f32 1.442695, %v512_v22  ;;  %v510_v25 = vsub.f32 %v478_v51, %v488_v23 }
 0x4cc   :  { %2444 = vpow2.f32 %v522_v24  ;;  %v518_v27 = vmul.f32 1.442695, %v510_v25 }
 0x4cd   :  { %v491_v28 = vpop.xlane.xlu0 %490 }
 0x4ce   :  { %2446 = vpow2.f32 %v518_v27  ;;  %v511_v29 = vsub.f32 %v479_v60, %v491_v28 }
 0x4d0   :  { %v520_v34 = vmul.f32 1.442695, %v511_v29 }
 0x4d1   :  { %v497_v30 = vpop.xlane.xlu0 %496  ;;  %v500_v31 = vpop.xlane.xlu1 %499 }
 0x4d2   :  { %v513_v33 = vsub.f32 %v481_v2, %v497_v30  ;;  %v514_v38 = vsub.f32 %v482_v5, %v500_v31 }
 0x4d4   :  { %v524_v35 = vmul.f32 1.442695, %v513_v33  ;;  %v526_v42 = vmul.f32 1.442695, %v514_v38 }
 0x4d5   :  { %v506_v40 = vpop.xlane.xlu1 %505  ;;  %v503_v41 = vpop.xlane.xlu0 %502 }
 0x4d6   :  { %2448 = vpow2.f32 %v524_v35  ;;  %v516_v11 = vsub.f32 %v484_v12, %v506_v40  ;;  %v515_v44 = vsub.f32 %v483_v14, %v503_v41 }
 0x4d7   :  { %2450 = vpow2.f32 %v520_v34 }
 0x4d8   :  { %v530_v43 = vmul.f32 1.442695, %v516_v11  ;;  %v528_v53 = vmul.f32 1.442695, %v515_v44 }
 0x4d9   :  { %v2891_v45 = vpop.eup %2444  ;;  %v585_v47 = vpop.permute.xlu1 %584 }
 0x4da   :  { %v509_v48 = vpop.xlane.xlu0 %508  ;;  %2452 = vpow2.f32 %v530_v43  ;;  %2167 = vmatprep.subr.bf16.mxu1 %v585_v47  ;;  %v540_v50 = vsel %vm201_vm0, %v2891_v45, 0.0 }
 0x4db   :  { %v517_v49 = vsub.f32 %v485_v18, %v509_v48  ;;  %v2447_v51 = vpop.eup %2446  ;;  %541 = vadd.xlane.f32.xlu1 %v540_v50  ;;  %2168 = vmatpush3.bf16.msra.mxu1 %v585_v47  ;;  %2454 = vpow2.f32 %v526_v42  ;;  %v2408_v48 = vld [vmem:[%s3306_s6 + $0x8] sm:$0xff]  }
 0x4dc   :  { %v534_v55 = vsel %vm201_vm0, %v2447_v51, 0.0  ;;  %2184 = vmatpush3.bf16.msra.mxu0 %v2408_v48 }
 0x4dd   :  { %v532_v54 = vmul.f32 1.442695, %v517_v49  ;;  %2185 = vmatprep.subr.bf16.mxu0 %v2545_v32 }
 0x4df   :  { %2456 = vpow2.f32 %v532_v54  ;;  %535 = vadd.xlane.f32.xlu1 %v534_v55 }
 0x4e0   :  { %2458 = vpow2.f32 %v528_v53  ;;  %v2409_v53 = vld [vmem:[%s3306_s6] sm:$0xff]  }
 0x4e1   :  { %2186 = vmatpush3.bf16.msra.mxu0 %v2409_v53 }
 0x4e2   :  { %2191 = vmatprep.subr.bf16.mxu0 %v2545_v32 }
 0x4e3   :  { %v2449_v56 = vpop.eup %2448 }
 0x4e4   :  { %v543_v58 = vsel %vm201_vm0, %v2449_v56, 0.0  ;;  %v2451_v59 = vpop.eup %2450 }
 0x4e5   :  { %544 = vadd.xlane.f32.xlu0 %v543_v58  ;;  %v537_v63 = vsel %vm201_vm0, %v2451_v59, 0.0 }
 0x4e7   :  { %v2897_v60 = vpop.eup %2452 }
 0x4e8   :  { %v552_v62 = vsel %vm201_vm0, %v2897_v60, 0.0  ;;  %v2455_v0 = vpop.eup %2454 }
 0x4e9   :  { %553 = vadd.xlane.f32.xlu1 %v552_v62  ;;  %538 = vadd.xlane.f32.xlu0 %v537_v63  ;;  %v546_v4 = vsel %vm201_vm0, %v2455_v0, 0.0 }
 0x4ec   :  { %v2457_v2 = vpop.eup %2456 }
 0x4ed   :  { %v555_v5 = vsel %vm201_vm0, %v2457_v2, 0.0  ;;  %v2459_v7 = vpop.eup %2458  ;;  %547 = vadd.xlane.f32.xlu1 %v546_v4 }
 0x4ee   :  { %556 = vadd.xlane.f32.xlu0 %v555_v5  ;;  %v549_v8 = vsel %vm201_vm0, %v2459_v7, 0.0 }
 0x4f2   :  { %550 = vadd.xlane.f32.xlu0 %v549_v8 }
 0x4fe   :  { %580 = vrot.lane.b32.xlu1 %v2753_v15, %s2551_s20 }
 0x502   :  { %578 = vrot.lane.b32.xlu1 %v2738_v1, %s2551_s20 }
 0x508   :  { %582 = vrot.lane.b32.xlu0 %v2745_v10, %s2551_s20 }
 0x564   :  { %v542_v9 = vpop.xlane.xlu1 %541 }
 0x568   :  { %v536_v12 = vpop.xlane.xlu1 %535 }
 0x569   :  { %2460 = vrcp.f32 %v536_v12 }
 0x56e   :  { %v545_v13 = vpop.xlane.xlu0 %544 }
 0x572   :  { %v554_v14 = vpop.xlane.xlu1 %553  ;;  %v539_v16 = vpop.xlane.xlu0 %538 }
 0x573   :  { %2462 = vrcp.f32 %v539_v16 }
 0x574   :  { %2464 = vrcp.f32 %v545_v13 }
 0x575   :  { %2466 = vrcp.f32 %v542_v9 }
 0x576   :  { %v548_v17 = vpop.xlane.xlu1 %547  ;;  %v2461_v20 = vpop.eup %2460 }
 0x577   :  { %v557_v18 = vpop.xlane.xlu0 %556  ;;  %2468 = vrcp.f32 %v548_v17  ;;  %v566_v23 = vmul.f32 %v2461_v20, %v2447_v51 }
 0x57a   :  { %v581_v15 = vpop.permute.xlu1 %580 }
 0x57b   :  { %v551_v19 = vpop.xlane.xlu0 %550 }
 0x57c   :  { %2470 = vrcp.f32 %v551_v19 }
 0x57d   :  { %2472 = vrcp.f32 %v557_v18 }
 0x57e   :  { %2474 = vrcp.f32 %v554_v14  ;;  %v579_v27 = vpop.permute.xlu1 %578 }
 0x57f   :  { %v583_v1 = vpop.permute.xlu0 %582 }
 0x580   :  { %2169 = vmatprep.subr.bf16.mxu1 %v583_v1  ;;  %v2463_v10 = vpop.eup %2462 }
 0x581   :  { %2170 = vmatpush3.bf16.msra.mxu1 %v583_v1  ;;  %v2465_v22 = vpop.eup %2464  ;;  %v567_v24 = vmul.f32 %v2463_v10, %v2451_v59 }
 0x582   :  { %2171 = vmatprep.subr.bf16.mxu1 %v581_v15  ;;  %v2467_v25 = vpop.eup %2466  ;;  %v569_v29 = vmul.f32 %v2465_v22, %v2449_v56 }
 0x583   :  { %v574_v28 = vpack.c.bf16 %v567_v24, %v566_v23  ;;  %v568_v31 = vmul.f32 %v2467_v25, %v2891_v45 }
 0x584   :  { %v2469_v30 = vpop.eup %2468 }
 0x585   :  { %2172 = vmatpush3.bf16.msra.mxu1 %v581_v15  ;;  %2175 = vmatprep.mubr.msk.bf16.mxu1 %vm201_vm0, %v574_v28  ;;  %v575_v34 = vpack.c.bf16 %v569_v29, %v568_v31  ;;  %v570_v35 = vmul.f32 %v2469_v30, %v2455_v0  ;;  %v2410_v30 = vld [vmem:[%s3307_s9 + $0x8] sm:$0xff]   ;;  %v2412_v31 = vld [vmem:[%s3308_s11 + $0x38] sm:$0xff]  }
 0x586   :  { %2173 = vmatprep.subr.bf16.mxu1 %v579_v27 }
 0x589   :  { %v2471_v33 = vpop.eup %2470  ;;  %2174 = vmatpush3.bf16.msra.mxu1 %v579_v27 }
 0x58a   :  { %v571_v38 = vmul.f32 %v2471_v33, %v2459_v7  ;;  %2199 = vmatprep.subr.bf16.mxu1 %v2545_v32  ;;  %v2473_v40 = vpop.eup %2472 }
 0x58b   :  { %v2475_v11 = vpop.eup %2474  ;;  %v573_v42 = vmul.f32 %v2473_v40, %v2457_v2 }
 0x58c   :  { %2176 = vmatmul.mubr.msk.bf16.vlgmr.msra.gmra.mxu1 %vm201_vm0, %v575_v34  ;;  %v576_v41 = vpack.c.bf16 %v571_v38, %v570_v35  ;;  %v572_v43 = vmul.f32 %v2475_v11, %v2897_v60 }
 0x58d   :  { %2200 = vmatpush3.bf16.msra.mxu1 %v2412_v31 }
 0x58e   :  { %2179 = vmatprep.mubr.msk.bf16.mxu1 %vm201_vm0, %v576_v41  ;;  %v577_v44 = vpack.c.bf16 %v573_v42, %v572_v43  ;;  %2201 = vmatprep.subr.bf16.mxu1 %v2545_v32 }
 0x594   :  { %2180 = vmatmul.mubr.msk.bf16.gmra.mxu1 %vm201_vm0, %v577_v44 }
 0x595   :  { %2215 = vmatprep.mubr.msk.bf16.mxu1 %vm2546_vm2, %v2545_v32 }
 0x64c   :  { %v2177_v45 = vpop.f32.mrf.mxu1 }
 0x64e   :  { %v636_v47 = vpop.f32.mrf.mxu1 }
 0x650   :  { %v2178_v49 = vpop.f32.mrf.mxu1 }
 0x651   :  { %v2349_v50 = vpack.i.bf16 %v2178_v49, %v2177_v45 }
 0x652   :  { %v639_v51 = vpop.f32.mrf.mxu1 }
 0x653   :  { %2350 = vrot.lane.b32.xlu1 %v2349_v50, %s2552_s1 }
 0x654   :  { %v2181_v54 = vpop.f32.mrf.mxu1 }
 0x656   :  { %v652_v55 = vpop.f32.mrf.mxu1 }
 0x658   :  { %v2182_v56 = vpop.f32.mrf.mxu1 }
 0x659   :  { %v2359_v58 = vpack.i.bf16 %v2182_v56, %v2181_v54  ;;  %v2010_v54 = vld [vmem:[%s3309_s7] ss:$0 sm:$0xff] }
 0x65a   :  { %v655_v59 = vpop.f32.mrf.mxu1 }
 0x65b   :  { %v2354_v60 = vpack.i.bf16 %v655_v59, %v652_v55  ;;  %2360 = vrot.lane.b32.xlu1 %v2359_v58, %s2553_s24 }
 0x65d   :  { %2355 = vrot.lane.b32.xlu0 %v2354_v60, %s3328_s25  ;;  %v2011_v60 = vld [vmem:[%s3310_s8] ss:$0 sm:$0xff] }
 0x6c5   :  { %v2351_v62 = vpop.permute.xlu1 %2350 }
 0x6c6   :  { %v2353_v63 = vunpack.i.h.bf16 %v2351_v62  ;;  %v2352_v0 = vunpack.i.l.bf16 %v2351_v62 }
 0x6c8   :  { %v691_v8 = vsel %vm388_vm3, %v636_v47, %v2352_v0  ;;  %v692_v9 = vsel %vm388_vm3, %v639_v51, %v2353_v63 }
 0x6cd   :  { %v2361_v2 = vpop.permute.xlu1 %2360 }
 0x6ce   :  { %v2363_v12 = vunpack.i.h.bf16 %v2361_v2  ;;  %v2362_v13 = vunpack.i.l.bf16 %v2361_v2 }
 0x6cf   :  { %v2356_v4 = vpop.permute.xlu0 %2355 }
 0x6d0   :  { %v2358_v5 = vunpack.i.h.bf16 %v2356_v4  ;;  %v2357_v7 = vunpack.i.l.bf16 %v2356_v4  ;;  %v2413_v4 = vld [vmem:[%s3308_s11 + $0x30] sm:$0xff]  }
 0x6d1   :  { %2202 = vmatpush3.bf16.msra.mxu1 %v2413_v4 }
 0x6d2   :  { %v695_v14 = vsel %vm693_vm15, %v692_v9, %v2358_v5  ;;  %v694_v16 = vsel %vm693_vm15, %v691_v8, %v2357_v7  ;;  %2203 = vmatprep.subr.bf16.mxu1 %v2545_v32  ;;  %v2414_v5 = vld [vmem:[%s3308_s11 + $0x28] sm:$0xff]   ;;  %v2415_v7 = vld [vmem:[%s3308_s11 + $0x20] sm:$0xff]   ;;  %v2416_v8 = vld [vmem:[%s3308_s11 + $0x18] sm:$0xff]  }
 0x6d3   :  { %v698_v17 = vsel %vm3330_vm13, %v695_v14, %v2363_v12  ;;  %v697_v18 = vsel %vm3330_vm13, %v694_v16, %v2362_v13  ;;  %v2417_v9 = vld [vmem:[%s3308_s11 + $0x10] sm:$0xff]   ;;  %v2418_v12 = vld [vmem:[%s3308_s11 + $0x8] sm:$0xff]   ;;  %v2419_v13 = vld [vmem:[%s3308_s11] sm:$0xff]  }
 0x6d4   :  { %v699_v19 = vpack.c.bf16 %v698_v17, %v697_v18  ;;  %v2012_v14 = vld [vmem:[%s3311_s10] ss:$0 sm:$0xff]  ;;  %vm3356_vm13 = vmand %vm2781_vm6, %vm2777_vm5 }
 0x6d5   :  { %2204 = vmatpush3.bf16.msra.mxu1 %v2414_v5  ;;  %vm3359_vm6 = vmand %vm2817_vm12, %vm2777_vm5 }
 0x6d6   :  { %2188 = vmatmul.mubr.msk.bf16.vlgmr.msra.gmra.mxu0 %vm3329_vm1, %v699_v19  ;;  %2205 = vmatprep.subr.bf16.mxu1 %v2545_v32 }
 0x6d7   :  { %2195 = vmatprep.mubr.msk.bf16.mxu0 %vm2546_vm2, %v2545_v32  ;;  %2192 = vmatpush3.bf16.msra.mxu0 %v2410_v30 }
 0x6d8   :  { %2193 = vmatprep.subr.bf16.mxu0 %v2545_v32 }
 0x6d9   :  { %2206 = vmatpush3.bf16.msra.mxu1 %v2415_v7 }
 0x6da   :  { %2207 = vmatprep.subr.bf16.mxu1 %v2545_v32 }
 0x6dd   :  { %2208 = vmatpush3.bf16.msra.mxu1 %v2416_v8 }
 0x6de   :  { %2209 = vmatprep.subr.bf16.mxu1 %v2545_v32 }
 0x6e1   :  { %2210 = vmatpush3.bf16.msra.mxu1 %v2417_v9  ;;  %v2025_v9 = vld [vmem:[%s3304_s3 + $0x1] ss:$0 sm:$0xff] }
 0x6e2   :  { %2211 = vmatprep.subr.bf16.mxu1 %v2545_v32 }
 0x6e5   :  { %2212 = vmatpush3.bf16.msra.mxu1 %v2418_v12 }
 0x6e6   :  { %2213 = vmatprep.subr.bf16.mxu1 %v2545_v32 }
 0x6e9   :  { %2214 = vmatpush3.bf16.msra.mxu1 %v2419_v13  ;;  %v2026_v13 = vld [vmem:[%s3305_s4 + $0x1] ss:$0 sm:$0xff] }
 0x796   :  { %v753_v15 = vpop.f32.mrf.mxu0 }
 0x797   :  { %v2941_v1 = vadd.f32 %v753_v15, %v2702_v21 }
 0x798   :  { %v2189_v20 = vpop.f32.mrf.mxu0 }
 0x799   :  { %v764_v10 = vsel %vm3329_vm1, %v2941_v1, 0.0  ;;  %v770_v22 = vmul.f32 %v2941_v1, %v2941_v1 }
 0x79a   :  { %765 = vadd.xlane.f32.xlu0 %v764_v10  ;;  %v756_v23 = vpop.f32.mrf.mxu0 }
 0x79b   :  { %v2948_v24 = vadd.f32 %v756_v23, %v2708_v26  ;;  %v772_v27 = vsel %vm3329_vm1, %v770_v22, 0.0  ;;  %v2411_v26 = vld [vmem:[%s3307_s9] sm:$0xff]  }
 0x79c   :  { %v2190_v25 = vpop.f32.mrf.mxu0  ;;  %2194 = vmatpush3.bf16.msra.mxu0 %v2411_v26 }
 0x79d   :  { %v767_v28 = vsel %vm3329_vm1, %v2948_v24, 0.0  ;;  %v771_v21 = vmul.f32 %v2948_v24, %v2948_v24  ;;  %2219 = vmatprep.subr.bf16.mxu0 %v2545_v32 }
 0x79e   :  { %773 = vadd.xlane.f32.xlu0 %v772_v27  ;;  %768 = vadd.xlane.f32.xlu1 %v767_v28 }
 0x79f   :  { %v775_v29 = vsel %vm3329_vm1, %v771_v21, 0.0 }
 0x7a2   :  { %776 = vadd.xlane.f32.xlu0 %v775_v29 }
 0x823   :  { %v766_v33 = vpop.xlane.xlu0 %765 }
 0x824   :  { %v778_v34 = vmul.f32 0.03125, %v766_v33 }
 0x826   :  { %v782_v40 = vmul.f32 %v778_v34, %v778_v34  ;;  %v786_v50 = vsub.f32 %v2941_v1, %v778_v34  ;;  %v2024_v34 = vld [vmem:[%s3312_s12] ss:$0 sm:$0xff] }
 0x827   :  { %v774_v35 = vpop.xlane.xlu0 %773  ;;  %v769_v38 = vpop.xlane.xlu1 %768 }
 0x828   :  { %v780_v41 = vmul.f32 0.03125, %v774_v35  ;;  %v779_v11 = vmul.f32 0.03125, %v769_v38 }
 0x82a   :  { %v784_v42 = vsub.f32 %v780_v41, %v782_v40  ;;  %v783_v45 = vmul.f32 %v779_v11, %v779_v11  ;;  %v787_v55 = vsub.f32 %v2948_v24, %v779_v11 }
 0x82b   :  { %v777_v43 = vpop.xlane.xlu0 %776 }
 0x82c   :  { %v788_v44 = vadd.f32 1e-06, %v784_v42  ;;  %v781_v47 = vmul.f32 0.03125, %v777_v43 }
 0x82e   :  { %2476 = vrsqrt.f32 %v788_v44  ;;  %v785_v48 = vsub.f32 %v781_v47, %v783_v45 }
 0x830   :  { %v789_v49 = vadd.f32 1e-06, %v785_v48 }
 0x832   :  { %2478 = vrsqrt.f32 %v789_v49  ;;  %v2420_v49 = vld [vmem:[%s3303_s5 + $0x18] sm:$0xff]  }
 0x83b   :  { %v2477_v51 = vpop.eup %2476 }
 0x83c   :  { %v792_v53 = vmul.f32 %v2477_v51, %v786_v50  ;;  %v2421_v50 = vld [vmem:[%s3303_s5 + $0x10] sm:$0xff]  }
 0x83e   :  { %v798_v59 = vmul.f32 %v2010_v54, %v792_v53 }
 0x83f   :  { %v2479_v56 = vpop.eup %2478 }
 0x840   :  { %v793_v58 = vmul.f32 %v2479_v56, %v787_v55  ;;  %v804_v63 = vadd.f32 %v2011_v60, %v798_v59 }
 0x842   :  { %v799_v62 = vmul.f32 %v2010_v54, %v793_v58 }
 0x844   :  { %v805_v0 = vadd.f32 %v2011_v60, %v799_v62 }
 0x846   :  { %v806_v2 = vpack.c.bf16 %v805_v0, %v804_v63 }
 0x848   :  { %2196 = vmatmul.mubr.msk.bf16.vlgmr.msra.gmra.mxu0 %vm3329_vm1, %v806_v2 }
 0x849   :  { %2223 = vmatprep.mubr.msk.bf16.mxu0 %vm2546_vm2, %v2545_v32  ;;  %2220 = vmatpush3.bf16.msra.mxu0 %v2420_v49 }
 0x84a   :  { %2221 = vmatprep.subr.bf16.mxu0 %v2545_v32 }
 0x84d   :  { %2222 = vmatpush3.bf16.msra.mxu0 %v2421_v50 }
 0x908   :  { %v865_v16 = vpop.f32.mrf.mxu0 }
 0x909   :  { %v866_v17 = vadd.f32 %v2012_v14, %v865_v16 }
 0x90a   :  { %v2197_v18 = vpop.f32.mrf.mxu0 }
 0x90b   :  { %v874_v19 = vmul.f32 0.70710677, %v866_v17  ;;  %v872_v28 = vmul.f32 0.5, %v866_v17 }
 0x90c   :  { %v868_v15 = vpop.f32.mrf.mxu0 }
 0x90d   :  { %2480 = verf.f32 %v874_v19  ;;  %v869_v20 = vadd.f32 %v2012_v14, %v868_v15 }
 0x90e   :  { %v2198_v10 = vpop.f32.mrf.mxu0 }
 0x90f   :  { %v875_v22 = vmul.f32 0.70710677, %v869_v20  ;;  %v873_v21 = vmul.f32 0.5, %v869_v20 }
 0x911   :  { %2482 = verf.f32 %v875_v22 }
 0x91a   :  { %v2481_v23 = vpop.eup %2480 }
 0x91b   :  { %v878_v25 = vadd.f32 1.0, %v2481_v23 }
 0x91d   :  { %v880_v30 = vmul.f32 %v878_v25, %v872_v28 }
 0x91e   :  { %v2483_v27 = vpop.eup %2482 }
 0x91f   :  { %v879_v29 = vadd.f32 1.0, %v2483_v27 }
 0x921   :  { %v881_v26 = vmul.f32 %v879_v29, %v873_v21 }
 0x923   :  { %v882_v31 = vpack.c.bf16 %v881_v26, %v880_v30 }
 0x925   :  { %2216 = vmatmul.mubr.bf16.vlgmr.msra.gmra.mxu1 %v882_v31 }
 0x9e5   :  { %v981_v33 = vpop.f32.mrf.mxu1 }
 0x9e6   :  { %v988_v35 = vadd.f32 %v981_v33, %v2941_v1 }
 0x9e7   :  { %v2217_v38 = vpop.f32.mrf.mxu1 }
 0x9e8   :  { %v3013_v40 = vadd.f32 %v2024_v34, %v988_v35 }
 0x9e9   :  { %v984_v41 = vpop.f32.mrf.mxu1 }
 0x9ea   :  { %v989_v11 = vadd.f32 %v984_v41, %v2948_v24  ;;  %v999_v42 = vsel %vm3329_vm1, %v3013_v40, 0.0  ;;  %v1005_v43 = vmul.f32 %v3013_v40, %v3013_v40 }
 0x9eb   :  { %1000 = vadd.xlane.f32.xlu0 %v999_v42  ;;  %v2218_v44 = vpop.f32.mrf.mxu1 }
 0x9ec   :  { %v3020_v45 = vadd.f32 %v2024_v34, %v989_v11  ;;  %v1007_v47 = vsel %vm3329_vm1, %v1005_v43, 0.0 }
 0x9ee   :  { %v1002_v1 = vsel %vm3329_vm1, %v3020_v45, 0.0  ;;  %v1006_v48 = vmul.f32 %v3020_v45, %v3020_v45 }
 0x9ef   :  { %1008 = vadd.xlane.f32.xlu0 %v1007_v47  ;;  %1003 = vadd.xlane.f32.xlu1 %v1002_v1 }
 0x9f0   :  { %v1010_v24 = vsel %vm3329_vm1, %v1006_v48, 0.0 }
 0x9f3   :  { %1011 = vadd.xlane.f32.xlu1 %v1010_v24 }
 0xa74   :  { %v1001_v51 = vpop.xlane.xlu0 %1000 }
 0xa75   :  { %v1013_v53 = vmul.f32 0.03125, %v1001_v51 }
 0xa77   :  { %v1017_v56 = vmul.f32 %v1013_v53, %v1013_v53  ;;  %v1021_v7 = vsub.f32 %v3013_v40, %v1013_v53 }
 0xa78   :  { %v1009_v54 = vpop.xlane.xlu0 %1008  ;;  %v1004_v55 = vpop.xlane.xlu1 %1003 }
 0xa79   :  { %v1015_v58 = vmul.f32 0.03125, %v1009_v54  ;;  %v1014_v59 = vmul.f32 0.03125, %v1004_v55 }
 0xa7b   :  { %v1019_v60 = vsub.f32 %v1015_v58, %v1017_v56  ;;  %v1018_v0 = vmul.f32 %v1014_v59, %v1014_v59  ;;  %v1022_v14 = vsub.f32 %v3020_v45, %v1014_v59 }
 0xa7c   :  { %v1012_v62 = vpop.xlane.xlu1 %1011 }
 0xa7d   :  { %v1023_v63 = vadd.f32 1e-06, %v1019_v60  ;;  %v1016_v2 = vmul.f32 0.03125, %v1012_v62 }
 0xa7f   :  { %2484 = vrsqrt.f32 %v1023_v63  ;;  %v1020_v4 = vsub.f32 %v1016_v2, %v1018_v0 }
 0xa81   :  { %v1024_v5 = vadd.f32 1e-06, %v1020_v4 }
 0xa83   :  { %2486 = vrsqrt.f32 %v1024_v5 }
 0xa8c   :  { %v2485_v8 = vpop.eup %2484 }
 0xa8d   :  { %v1027_v12 = vmul.f32 %v2485_v8, %v1021_v7 }
 0xa8f   :  { %v1033_v16 = vmul.f32 %v2025_v9, %v1027_v12 }
 0xa90   :  { %v2487_v17 = vpop.eup %2486 }
 0xa91   :  { %v1028_v18 = vmul.f32 %v2487_v17, %v1022_v14  ;;  %v1039_v19 = vadd.f32 %v2026_v13, %v1033_v16 }
 0xa93   :  { %v1034_v15 = vmul.f32 %v2025_v9, %v1028_v18 }
 0xa95   :  { %v1040_v20 = vadd.f32 %v2026_v13, %v1034_v15 }
 0xa97   :  { %v1041_v10 = vpack.c.bf16 %v1040_v20, %v1039_v19 }
 0xa99   :  { %2224 = vmatmul.mubr.msk.bf16.vlgmr.msra.gmra.mxu0 %vm3329_vm1, %v1041_v10  ;;  %vm3355_vm1 = vmand %vm2773_vm4, %vm2777_vm5 }
 0xa9a   :  { %vm3358_vm4 = vmand %vm2808_vm10, %vm2777_vm5 }
 0xa9b   :  { %vm3361_vm10 = vmand %vm2857_vm7, %vm2777_vm5 }
 0xb59   :  { %v1095_v22 = vpop.f32.mrf.mxu0 }
 0xb5b   :  { %v2225_v23 = vpop.f32.mrf.mxu0 }
 0xb5d   :  { %v1098_v25 = vpop.f32.mrf.mxu0 }
 0xb5e   :  { %v3044_v27 = vpack.c.bf16 %v1098_v25, %v1095_v22  ;;  %v2369_v28 = vpack.i.bf16 %v1098_v25, %v1095_v22 }
 0xb5f   :  { %v2226_v21 = vpop.f32.mrf.mxu0 }
 0xb60   :  { %2370 = vrot.lane.b32.xlu1 %v2369_v28, %s2547_s30  ;;  %2365 = vrot.lane.b32.xlu0 %v2369_v28, %s2548_s2 }
 0xb61   :  { %2235 = vmatprep.mubr.msk.bf16.mxu0 %vm388_vm3, %v3044_v27 }
 0xb64   :  { %2375 = vrot.lane.b32.xlu1 %v2369_v28, %s2549_s19  ;;  %s3362_s19 = smov 16  }
 0xbd2   :  { %v2371_v29 = vpop.permute.xlu1 %2370  ;;  %v2366_v30 = vpop.permute.xlu0 %2365 }
 0xbd3   :  { %v2373_v26 = vunpack.i.h.bf16 %v2371_v29  ;;  %v2372_v31 = vunpack.i.l.bf16 %v2371_v29  ;;  %v2368_v33 = vunpack.i.h.bf16 %v2366_v30  ;;  %v2367_v34 = vunpack.i.l.bf16 %v2366_v30 }
 0xbd5   :  { %v3051_v35 = vpack.c.bf16 %v2373_v26, %v2372_v31  ;;  %v1125_v38 = vpack.c.bf16 %v2368_v33, %v2367_v34 }
 0xbd6   :  { %v2376_v41 = vpop.permute.xlu1 %2375 }
 0xbd7   :  { %v2378_v11 = vunpack.i.h.bf16 %v2376_v41  ;;  %v2377_v42 = vunpack.i.l.bf16 %v2376_v41  ;;  %1134 = vrot.lane.b32.xlu0 %v3051_v35, %s2550_s0  ;;  %1136 = vrot.lane.b32.xlu1 %v1125_v38, %s2550_s0 }
 0xbd9   :  { %v3056_v43 = vpack.c.bf16 %v2378_v11, %v2377_v42 }
 0xbdb   :  { %1132 = vrot.lane.b32.xlu1 %v3056_v43, %s2550_s0  ;;  %1130 = vrot.lane.b32.xlu0 %v3044_v27, %s2550_s0 }
 0xc49   :  { %v1137_v44 = vpop.permute.xlu1 %1136  ;;  %v1135_v1 = vpop.permute.xlu0 %1134 }
 0xc4a   :  { %v1160_v47 = vsel %vm388_vm3, %v1137_v44, 0  ;;  %2319 = vmatprep.subr.msk.bf16.mxu0 %vm388_vm3, %v1137_v44  ;;  %v1157_v48 = vsel %vm388_vm3, %v1135_v1, 0 }
 0xc4b   :  { %2228 = vmatpush3.bf16.xpose.msra.mxu0 %v1160_v47 }
 0xc4c   :  { %2320 = vmatprep.subr.msk.bf16.mxu0 %vm388_vm3, %v1135_v1 }
 0xc4d   :  { %v1133_v24 = vpop.permute.xlu1 %1132  ;;  %v1131_v50 = vpop.permute.xlu0 %1130 }
 0xc4e   :  { %v1154_v49 = vsel %vm388_vm3, %v1133_v24, 0  ;;  %v1151_v51 = vsel %vm388_vm3, %v1131_v50, 0 }
 0xc53   :  { %2230 = vmatpush3.bf16.xpose.msra.mxu0 %v1157_v48 }
 0xc54   :  { %2321 = vmatprep.subr.msk.bf16.mxu0 %vm388_vm3, %v1133_v24 }
 0xc5b   :  { %2232 = vmatpush3.bf16.xpose.msra.mxu0 %v1154_v49 }
 0xc5c   :  { %2322 = vmatprep.subr.msk.bf16.mxu0 %vm388_vm3, %v1131_v50 }
 0xc63   :  { %2234 = vmatpush3.bf16.xpose.msra.mxu0 %v1151_v51 }
 0xc64   :  { %2259 = vmatprep.subr.bf16.mxu0 %v2545_v32 }
 0xc6a   :  { %2236 = vmatmul.mubr.msk.bf16.vlgmr.msra.gmra.mxu0 %vm388_vm3, %v3056_v43 }
 0xc6b   :  { %2239 = vmatprep.mubr.msk.bf16.mxu0 %vm388_vm3, %v3051_v35 }
 0xc72   :  { %2240 = vmatmul.mubr.msk.bf16.gmra.mxu0 %vm388_vm3, %v1125_v38 }
 0xc73   :  { %2263 = vmatprep.mubr.msk.bf16.mxu0 %vm2546_vm2, %v2545_v32 }
 0xd2a   :  { %v2237_v53 = vpop.f32.mrf.mxu0 }
 0xd2b   :  { %v1229_v54 = vsel %vm3355_vm1, %v2237_v53, -1e+30  ;;  %vm3357_vm1 = vmand %vm2798_vm9, %vm2777_vm5 }
 0xd2c   :  { %v1196_v55 = vpop.f32.mrf.mxu0  ;;  %v1241_v56 = vsel %vm201_vm0, %v1229_v54, -inf  ;;  %vm3360_vm9 = vmand %vm2844_vm11, %vm2777_vm5  ;;  %vm3363_vm5 = vcmask 195584  }
 0xd2d   :  { %v1227_v58 = vsel %vm3356_vm13, %v1196_v55, -1e+30  ;;  %1242 = vmax.xlane.f32.xlu0 %v1241_v56  ;;  %vm3364_vm7 = vmmov %vm3363_vm5 }
 0xd2e   :  { %v2238_v59 = vpop.f32.mrf.mxu0  ;;  %v1235_v60 = vsel %vm201_vm0, %v1227_v58, -inf }
 0xd2f   :  { %1236 = vmax.xlane.f32.xlu1 %v1235_v60  ;;  %v1230_v39 = vsel %vm3358_vm4, %v2238_v59, -1e+30 }
 0xd30   :  { %v1199_v62 = vpop.f32.mrf.mxu0  ;;  %v1244_v5 = vsel %vm201_vm0, %v1230_v39, -inf }
 0xd31   :  { %v1228_v36 = vsel %vm3357_vm1, %v1199_v62, -1e+30 }
 0xd32   :  { %v2241_v63 = vpop.f32.mrf.mxu0  ;;  %v1238_v0 = vsel %vm201_vm0, %v1228_v36, -inf }
 0xd33   :  { %1239 = vmax.xlane.f32.xlu0 %v1238_v0  ;;  %v1233_v52 = vsel %vm96_vm8, %v2241_v63, -1e+30  ;;  %vm3365_vm8 = vcmask 261120  }
 0xd34   :  { %v1212_v2 = vpop.f32.mrf.mxu0  ;;  %v1253_v9 = vsel %vm201_vm0, %v1233_v52, -inf }
 0xd35   :  { %v1231_v46 = vsel %vm3359_vm6, %v1212_v2, -1e+30 }
 0xd36   :  { %v2242_v4 = vpop.f32.mrf.mxu0  ;;  %v1247_v7 = vsel %vm201_vm0, %v1231_v46, -inf }
 0xd37   :  { %1245 = vmax.xlane.f32.xlu0 %v1244_v5  ;;  %1248 = vmax.xlane.f32.xlu1 %v1247_v7  ;;  %v1234_v61 = vsel %vm3361_vm10, %v2242_v4, -1e+30 }
 0xd38   :  { %v1215_v8 = vpop.f32.mrf.mxu0  ;;  %v1256_v13 = vsel %vm201_vm0, %v1234_v61, -inf }
 0xd39   :  { %v1232_v57 = vsel %vm3360_vm9, %v1215_v8, -1e+30 }
 0xd3a   :  { %v1250_v12 = vsel %vm201_vm0, %v1232_v57, -inf }
 0xd3b   :  { %1254 = vmax.xlane.f32.xlu1 %v1253_v9  ;;  %1251 = vmax.xlane.f32.xlu0 %v1250_v12 }
 0xd3f   :  { %1257 = vmax.xlane.f32.xlu0 %v1256_v13 }
 0xd4c   :  { %1333 = vrot.lane.b32.xlu1 %v1125_v38, %s2551_s20 }
 0xdb6   :  { %v1243_v3 = vpop.xlane.xlu0 %1242 }
 0xdb7   :  { %v1261_v14 = vsub.f32 %v1229_v54, %v1243_v3 }
 0xdb8   :  { %v1237_v16 = vpop.xlane.xlu1 %1236 }
 0xdb9   :  { %v1271_v17 = vmul.f32 1.442695, %v1261_v14  ;;  %v1259_v18 = vsub.f32 %v1227_v58, %v1237_v16 }
 0xdbb   :  { %2488 = vpow2.f32 %v1271_v17  ;;  %v1267_v19 = vmul.f32 1.442695, %v1259_v18 }
 0xdbc   :  { %v1240_v15 = vpop.xlane.xlu0 %1239 }
 0xdbd   :  { %2490 = vpow2.f32 %v1267_v19  ;;  %v1260_v6 = vsub.f32 %v1228_v36, %v1240_v15 }
 0xdbf   :  { %v1269_v22 = vmul.f32 1.442695, %v1260_v6 }
 0xdc0   :  { %v1246_v37 = vpop.xlane.xlu0 %1245  ;;  %v1249_v20 = vpop.xlane.xlu1 %1248 }
 0xdc1   :  { %v1262_v10 = vsub.f32 %v1230_v39, %v1246_v37  ;;  %v1263_v25 = vsub.f32 %v1231_v46, %v1249_v20 }
 0xdc3   :  { %v1273_v23 = vmul.f32 1.442695, %v1262_v10  ;;  %v1275_v30 = vmul.f32 1.442695, %v1263_v25 }
 0xdc4   :  { %v1255_v28 = vpop.xlane.xlu1 %1254  ;;  %v1252_v21 = vpop.xlane.xlu0 %1251 }
 0xdc5   :  { %2492 = vpow2.f32 %v1273_v23  ;;  %v1265_v29 = vsub.f32 %v1233_v52, %v1255_v28  ;;  %v1264_v31 = vsub.f32 %v1232_v57, %v1252_v21  ;;  %v2423_v28 = vld [vmem:[%s3306_s6 + $0x10] sm:$0xff]  }
 0xdc6   :  { %2494 = vpow2.f32 %v1269_v22  ;;  %v2422_v22 = vld [vmem:[%s3306_s6 + $0x18] sm:$0xff]  }
 0xdc7   :  { %v1279_v26 = vmul.f32 1.442695, %v1265_v29  ;;  %v1277_v44 = vmul.f32 1.442695, %v1264_v31  ;;  %2260 = vmatpush3.bf16.msra.mxu0 %v2422_v22 }
 0xdc8   :  { %v3127_v33 = vpop.eup %2488  ;;  %v1334_v34 = vpop.permute.xlu1 %1333  ;;  %2261 = vmatprep.subr.bf16.mxu0 %v2545_v32 }
 0xdc9   :  { %v1258_v38 = vpop.xlane.xlu0 %1257  ;;  %2496 = vpow2.f32 %v1279_v26  ;;  %2243 = vmatprep.subr.bf16.mxu1 %v1334_v34  ;;  %v1289_v11 = vsel %vm201_vm0, %v3127_v33, 0.0 }
 0xdca   :  { %v1266_v41 = vsub.f32 %v1234_v61, %v1258_v38  ;;  %v2491_v42 = vpop.eup %2490  ;;  %1290 = vadd.xlane.f32.xlu1 %v1289_v11  ;;  %2244 = vmatpush3.bf16.msra.mxu1 %v1334_v34  ;;  %2498 = vpow2.f32 %v1275_v30 }
 0xdcb   :  { %v1283_v1 = vsel %vm201_vm0, %v2491_v42, 0.0  ;;  %2262 = vmatpush3.bf16.msra.mxu0 %v2423_v28 }
 0xdcc   :  { %v1281_v47 = vmul.f32 1.442695, %v1266_v41  ;;  %2275 = vmatprep.subr.bf16.mxu0 %v2545_v32 }
 0xdce   :  { %2500 = vpow2.f32 %v1281_v47  ;;  %1284 = vadd.xlane.f32.xlu1 %v1283_v1 }
 0xdcf   :  { %2502 = vpow2.f32 %v1277_v44 }
 0xdd2   :  { %v2493_v48 = vpop.eup %2492 }
 0xdd3   :  { %v1292_v24 = vsel %vm201_vm0, %v2493_v48, 0.0  ;;  %v2495_v49 = vpop.eup %2494 }
 0xdd4   :  { %1293 = vadd.xlane.f32.xlu0 %v1292_v24  ;;  %v1286_v53 = vsel %vm201_vm0, %v2495_v49, 0.0 }
 0xdd6   :  { %v3133_v50 = vpop.eup %2496 }
 0xdd7   :  { %v1301_v51 = vsel %vm201_vm0, %v3133_v50, 0.0  ;;  %v2499_v54 = vpop.eup %2498 }
 0xdd8   :  { %1302 = vadd.xlane.f32.xlu1 %v1301_v51  ;;  %1287 = vadd.xlane.f32.xlu0 %v1286_v53  ;;  %v1295_v56 = vsel %vm201_vm0, %v2499_v54, 0.0 }
 0xddb   :  { %v2501_v55 = vpop.eup %2500 }
 0xddc   :  { %v1304_v58 = vsel %vm201_vm0, %v2501_v55, 0.0  ;;  %v2503_v59 = vpop.eup %2502  ;;  %1296 = vadd.xlane.f32.xlu1 %v1295_v56 }
 0xddd   :  { %1305 = vadd.xlane.f32.xlu0 %v1304_v58  ;;  %v1298_v60 = vsel %vm201_vm0, %v2503_v59, 0.0 }
 0xde1   :  { %1299 = vadd.xlane.f32.xlu0 %v1298_v60 }
 0xded   :  { %1329 = vrot.lane.b32.xlu1 %v3056_v43, %s2551_s20 }
 0xdf1   :  { %1327 = vrot.lane.b32.xlu1 %v3044_v27, %s2551_s20 }
 0xdf7   :  { %1331 = vrot.lane.b32.xlu0 %v3051_v35, %s2551_s20 }
 0xe53   :  { %v1291_v62 = vpop.xlane.xlu1 %1290 }
 0xe57   :  { %v1285_v36 = vpop.xlane.xlu1 %1284 }
 0xe58   :  { %2504 = vrcp.f32 %v1285_v36 }
 0xe5d   :  { %v1294_v63 = vpop.xlane.xlu0 %1293 }
 0xe61   :  { %v1303_v0 = vpop.xlane.xlu1 %1302  ;;  %v1288_v39 = vpop.xlane.xlu0 %1287 }
 0xe62   :  { %2506 = vrcp.f32 %v1288_v39 }
 0xe63   :  { %2508 = vrcp.f32 %v1294_v63 }
 0xe64   :  { %2510 = vrcp.f32 %v1291_v62 }
 0xe65   :  { %v1297_v2 = vpop.xlane.xlu1 %1296  ;;  %v2505_v5 = vpop.eup %2504 }
 0xe66   :  { %v1306_v46 = vpop.xlane.xlu0 %1305  ;;  %2512 = vrcp.f32 %v1297_v2  ;;  %v1315_v52 = vmul.f32 %v2505_v5, %v2491_v42  ;;  %v2424_v5 = vld [vmem:[%s3307_s9 + $0x18] sm:$0xff]  }
 0xe69   :  { %v1330_v43 = vpop.permute.xlu1 %1329 }
 0xe6a   :  { %v1300_v4 = vpop.xlane.xlu0 %1299 }
 0xe6b   :  { %2514 = vrcp.f32 %v1300_v4 }
 0xe6c   :  { %2516 = vrcp.f32 %v1306_v46 }
 0xe6d   :  { %2518 = vrcp.f32 %v1303_v0  ;;  %v1328_v9 = vpop.permute.xlu1 %1327 }
 0xe6e   :  { %v1332_v27 = vpop.permute.xlu0 %1331 }
 0xe6f   :  { %2245 = vmatprep.subr.bf16.mxu1 %v1332_v27  ;;  %v2507_v35 = vpop.eup %2506 }
 0xe70   :  { %2246 = vmatpush3.bf16.msra.mxu1 %v1332_v27  ;;  %v2509_v7 = vpop.eup %2508  ;;  %v1316_v8 = vmul.f32 %v2507_v35, %v2495_v49  ;;  %v2426_v35 = vld [vmem:[%s3308_s11 + $0x78] sm:$0xff]  }
 0xe71   :  { %2247 = vmatprep.subr.bf16.mxu1 %v1330_v43  ;;  %v2511_v57 = vpop.eup %2510  ;;  %v1318_v61 = vmul.f32 %v2509_v7, %v2493_v48 }
 0xe72   :  { %v1323_v12 = vpack.c.bf16 %v1316_v8, %v1315_v52  ;;  %v1317_v3 = vmul.f32 %v2511_v57, %v3127_v33 }
 0xe73   :  { %v2513_v13 = vpop.eup %2512 }
 0xe74   :  { %2248 = vmatpush3.bf16.msra.mxu1 %v1330_v43  ;;  %2251 = vmatprep.mubr.msk.bf16.mxu1 %vm201_vm0, %v1323_v12  ;;  %v1324_v16 = vpack.c.bf16 %v1318_v61, %v1317_v3  ;;  %v1319_v17 = vmul.f32 %v2513_v13, %v2499_v54 }
 0xe75   :  { %2249 = vmatprep.subr.bf16.mxu1 %v1328_v9 }
 0xe78   :  { %v2515_v14 = vpop.eup %2514  ;;  %2250 = vmatpush3.bf16.msra.mxu1 %v1328_v9 }
 0xe79   :  { %v1320_v18 = vmul.f32 %v2515_v14, %v2503_v59  ;;  %2267 = vmatprep.subr.bf16.mxu1 %v2545_v32  ;;  %v2517_v19 = vpop.eup %2516 }
 0xe7a   :  { %v2519_v6 = vpop.eup %2518  ;;  %v1322_v37 = vmul.f32 %v2517_v19, %v2501_v55 }
 0xe7b   :  { %2252 = vmatmul.mubr.msk.bf16.vlgmr.msra.gmra.mxu1 %vm201_vm0, %v1324_v16  ;;  %v1325_v15 = vpack.c.bf16 %v1320_v18, %v1319_v17  ;;  %v1321_v20 = vmul.f32 %v2519_v6, %v3133_v50 }
 0xe7c   :  { %2268 = vmatpush3.bf16.msra.mxu1 %v2424_v5 }
 0xe7d   :  { %2255 = vmatprep.mubr.msk.bf16.mxu1 %vm201_vm0, %v1325_v15  ;;  %v1326_v10 = vpack.c.bf16 %v1322_v37, %v1321_v20  ;;  %2269 = vmatprep.subr.bf16.mxu1 %v2545_v32  ;;  %v2041_v37 = vld [vmem:[%s3309_s7 + $0x1] ss:$0 sm:$0xff] }
 0xe83   :  { %2256 = vmatmul.mubr.msk.bf16.gmra.mxu1 %vm201_vm0, %v1326_v10  ;;  %v2042_v10 = vld [vmem:[%s3310_s8 + $0x1] ss:$0 sm:$0xff] }
 0xe84   :  { %2271 = vmatprep.mubr.msk.bf16.mxu1 %vm2546_vm2, %v2545_v32 }
 0xf3b   :  { %v2253_v23 = vpop.f32.mrf.mxu1 }
 0xf3d   :  { %v1385_v25 = vpop.f32.mrf.mxu1 }
 0xf3f   :  { %v2254_v21 = vpop.f32.mrf.mxu1 }
 0xf40   :  { %v2379_v29 = vpack.i.bf16 %v2254_v21, %v2253_v23 }
 0xf41   :  { %v1388_v30 = vpop.f32.mrf.mxu1 }
 0xf42   :  { %2380 = vrot.lane.b32.xlu1 %v2379_v29, %s2552_s1 }
 0xf43   :  { %v2257_v26 = vpop.f32.mrf.mxu1 }
 0xf45   :  { %v1401_v31 = vpop.f32.mrf.mxu1 }
 0xf47   :  { %v2258_v33 = vpop.f32.mrf.mxu1 }
 0xf48   :  { %v2389_v34 = vpack.i.bf16 %v2258_v33, %v2257_v26  ;;  %v2428_v33 = vld [vmem:[%s3308_s11 + $0x68] sm:$0xff]  }
 0xf49   :  { %v1404_v38 = vpop.f32.mrf.mxu1 }
 0xf4a   :  { %v2384_v41 = vpack.i.bf16 %v1404_v38, %v1401_v31  ;;  %2390 = vrot.lane.b32.xlu1 %v2389_v34, %s2553_s24  ;;  %v2427_v31 = vld [vmem:[%s3308_s11 + $0x70] sm:$0xff]   ;;  %v2429_v34 = vld [vmem:[%s3308_s11 + $0x60] sm:$0xff]   ;;  %v2430_v38 = vld [vmem:[%s3308_s11 + $0x58] sm:$0xff]  }
 0xf4c   :  { %2385 = vrot.lane.b32.xlu0 %v2384_v41, %s3362_s19  ;;  %v2431_v41 = vld [vmem:[%s3308_s11 + $0x50] sm:$0xff]  }
 0xfb4   :  { %v2381_v11 = vpop.permute.xlu1 %2380 }
 0xfb5   :  { %v2383_v42 = vunpack.i.h.bf16 %v2381_v11  ;;  %v2382_v44 = vunpack.i.l.bf16 %v2381_v11  ;;  %v2432_v11 = vld [vmem:[%s3308_s11 + $0x48] sm:$0xff]  }
 0xfb7   :  { %v1440_v49 = vsel %vm388_vm3, %v1385_v25, %v2382_v44  ;;  %v1441_v50 = vsel %vm388_vm3, %v1388_v30, %v2383_v42  ;;  %vm3366_vm3 = vmmov %vm3365_vm8  ;;  %v2433_v42 = vld [vmem:[%s3308_s11 + $0x40] sm:$0xff]  }
 0xfb8   :  { %vm3367_vm11 = vmmov %vm3366_vm3  ;;  %v2043_v44 = vld [vmem:[%s3311_s10 + $0x1] ss:$0 sm:$0xff] }
 0xfb9   :  { %vm3368_vm12 = vmmov %vm3366_vm3 }
 0xfba   :  { %vm3369_vm13 = vmmov %vm3366_vm3 }
 0xfbb   :  { %vm3370_vm14 = vmmov %vm3366_vm3 }
 0xfbc   :  { %v2391_v47 = vpop.permute.xlu1 %2390  ;;  %vm3371_vm1 = vmmov %vm3366_vm3 }
 0xfbd   :  { %v2393_v51 = vunpack.i.h.bf16 %v2391_v47  ;;  %v2392_v53 = vunpack.i.l.bf16 %v2391_v47  ;;  %vm3372_vm4 = vmmov %vm3371_vm1 }
 0xfbe   :  { %v2386_v1 = vpop.permute.xlu0 %2385  ;;  %vm3373_vm6 = vmmov %vm3371_vm1 }
 0xfbf   :  { %v2388_v48 = vunpack.i.h.bf16 %v2386_v1  ;;  %v2387_v24 = vunpack.i.l.bf16 %v2386_v1  ;;  %vm3374_vm9 = vmmov %vm3371_vm1 }
 0xfc0   :  { %vm3375_vm10 = vmmov %vm3371_vm1 }
 0xfc1   :  { %v1443_v54 = vsel %vm693_vm15, %v1441_v50, %v2388_v48  ;;  %v1442_v55 = vsel %vm693_vm15, %v1440_v49, %v2387_v24 }
 0xfc2   :  { %v1445_v56 = vsel %vm3363_vm5, %v1443_v54, %v2393_v51  ;;  %v1444_v58 = vsel %vm3364_vm7, %v1442_v55, %v2392_v53 }
 0xfc3   :  { %v1446_v59 = vpack.c.bf16 %v1445_v56, %v1444_v58 }
 0xfc5   :  { %2264 = vmatmul.mubr.msk.bf16.vlgmr.msra.gmra.mxu0 %vm3365_vm8, %v1446_v59 }
 0xfc6   :  { %2291 = vmatprep.mubr.msk.bf16.mxu0 %vm2546_vm2, %v2545_v32  ;;  %2276 = vmatpush3.bf16.msra.mxu0 %v2426_v35 }
 0xfc7   :  { %2277 = vmatprep.subr.bf16.mxu0 %v2545_v32 }
 0xfca   :  { %2278 = vmatpush3.bf16.msra.mxu0 %v2427_v31 }
 0xfcb   :  { %2279 = vmatprep.subr.bf16.mxu0 %v2545_v32 }
 0xfce   :  { %2280 = vmatpush3.bf16.msra.mxu0 %v2428_v33  ;;  %v2057_v33 = vld [vmem:[%s3315_s14] ss:$0 sm:$0xff] }
 0xfcf   :  { %2281 = vmatprep.subr.bf16.mxu0 %v2545_v32 }
 0xfd2   :  { %2282 = vmatpush3.bf16.msra.mxu0 %v2429_v34 }
 0xfd3   :  { %2283 = vmatprep.subr.bf16.mxu0 %v2545_v32 }
 0xfd6   :  { %2284 = vmatpush3.bf16.msra.mxu0 %v2430_v38 }
 0xfd7   :  { %2285 = vmatprep.subr.bf16.mxu0 %v2545_v32 }
 0xfda   :  { %2286 = vmatpush3.bf16.msra.mxu0 %v2431_v41 }
 0xfdb   :  { %2287 = vmatprep.subr.bf16.mxu0 %v2545_v32 }
 0xfde   :  { %2288 = vmatpush3.bf16.msra.mxu0 %v2432_v11 }
 0xfdf   :  { %2289 = vmatprep.subr.bf16.mxu0 %v2545_v32 }
 0xfe2   :  { %2290 = vmatpush3.bf16.msra.mxu0 %v2433_v42  ;;  %v2436_v42 = vld [vmem:[%s3316_s17 + $0x18] sm:$0xff]  }
0x1085   :  { %v1500_v60 = vpop.f32.mrf.mxu0 }
0x1086   :  { %v3177_v62 = vadd.f32 %v1500_v60, %v3013_v40 }
0x1087   :  { %v2265_v36 = vpop.f32.mrf.mxu0 }
0x1088   :  { %v1511_v63 = vsel %vm3366_vm3, %v3177_v62, 0.0  ;;  %v1517_v0 = vmul.f32 %v3177_v62, %v3177_v62 }
0x1089   :  { %1512 = vadd.xlane.f32.xlu0 %v1511_v63  ;;  %v1503_v39 = vpop.f32.mrf.mxu0 }
0x108a   :  { %v3184_v2 = vadd.f32 %v1503_v39, %v3020_v45  ;;  %v1519_v4 = vsel %vm3367_vm11, %v1517_v0, 0.0  ;;  %v2425_v45 = vld [vmem:[%s3307_s9 + $0x10] sm:$0xff]  }
0x108b   :  { %v2266_v46 = vpop.f32.mrf.mxu0  ;;  %2270 = vmatpush3.bf16.msra.mxu1 %v2425_v45 }
0x108c   :  { %v1514_v43 = vsel %vm3368_vm12, %v3184_v2, 0.0  ;;  %v1518_v40 = vmul.f32 %v3184_v2, %v3184_v2  ;;  %2295 = vmatprep.subr.bf16.mxu1 %v2545_v32  ;;  %v2055_v46 = vld [vmem:[%s3312_s12 + $0x1] ss:$0 sm:$0xff] }
0x108d   :  { %1520 = vadd.xlane.f32.xlu0 %v1519_v4  ;;  %1515 = vadd.xlane.f32.xlu1 %v1514_v43 }
0x108e   :  { %v1522_v27 = vsel %vm3369_vm13, %v1518_v40, 0.0 }
0x1091   :  { %1523 = vadd.xlane.f32.xlu0 %v1522_v27 }
0x1112   :  { %v1513_v7 = vpop.xlane.xlu0 %1512 }
0x1113   :  { %v1525_v52 = vmul.f32 0.03125, %v1513_v7 }
0x1115   :  { %v1529_v9 = vmul.f32 %v1525_v52, %v1525_v52  ;;  %v1533_v15 = vsub.f32 %v3177_v62, %v1525_v52 }
0x1116   :  { %v1521_v8 = vpop.xlane.xlu0 %1520  ;;  %v1516_v57 = vpop.xlane.xlu1 %1515 }
0x1117   :  { %v1527_v12 = vmul.f32 0.03125, %v1521_v8  ;;  %v1526_v61 = vmul.f32 0.03125, %v1516_v57 }
0x1119   :  { %v1531_v13 = vsub.f32 %v1527_v12, %v1529_v9  ;;  %v1530_v16 = vmul.f32 %v1526_v61, %v1526_v61  ;;  %v1534_v23 = vsub.f32 %v3184_v2, %v1526_v61  ;;  %v2435_v12 = vld [vmem:[%s3313_s15] sm:$0xff]  }
0x111a   :  { %v1524_v3 = vpop.xlane.xlu0 %1523 }
0x111b   :  { %v1535_v14 = vadd.f32 1e-06, %v1531_v13  ;;  %v1528_v17 = vmul.f32 0.03125, %v1524_v3 }
0x111d   :  { %2520 = vrsqrt.f32 %v1535_v14  ;;  %v1532_v18 = vsub.f32 %v1528_v17, %v1530_v16 }
0x111f   :  { %v1536_v19 = vadd.f32 1e-06, %v1532_v18 }
0x1121   :  { %2522 = vrsqrt.f32 %v1536_v19 }
0x112a   :  { %v2521_v6 = vpop.eup %2520 }
0x112b   :  { %v1539_v20 = vmul.f32 %v2521_v6, %v1533_v15 }
0x112d   :  { %v1545_v22 = vmul.f32 %v2041_v37, %v1539_v20 }
0x112e   :  { %v2523_v25 = vpop.eup %2522 }
0x112f   :  { %v1540_v28 = vmul.f32 %v2523_v25, %v1534_v23  ;;  %v1551_v21 = vadd.f32 %v2042_v10, %v1545_v22 }
0x1131   :  { %v1546_v29 = vmul.f32 %v2041_v37, %v1540_v28 }
0x1133   :  { %v1552_v30 = vadd.f32 %v2042_v10, %v1546_v29 }
0x1135   :  { %v1553_v26 = vpack.c.bf16 %v1552_v30, %v1551_v21  ;;  %v2056_v21 = vld [vmem:[%s3314_s13] ss:$0 sm:$0xff] }
0x1137   :  { %2272 = vmatmul.mubr.msk.bf16.vlgmr.msra.gmra.mxu1 %vm3370_vm14, %v1553_v26 }
0x1138   :  { %2299 = vmatprep.mubr.msk.bf16.mxu1 %vm2546_vm2, %v2545_v32 }
0x11f7   :  { %v1612_v47 = vpop.f32.mrf.mxu1 }
0x11f8   :  { %v1613_v1 = vadd.f32 %v2043_v44, %v1612_v47  ;;  %v2438_v47 = vld [vmem:[%s3316_s17 + $0x8] sm:$0xff]  }
0x11f9   :  { %v2273_v48 = vpop.f32.mrf.mxu1 }
0x11fa   :  { %v1621_v24 = vmul.f32 0.70710677, %v1613_v1  ;;  %v1619_v58 = vmul.f32 0.5, %v1613_v1  ;;  %v2439_v1 = vld [vmem:[%s3316_s17] sm:$0xff]  }
0x11fb   :  { %v1615_v49 = vpop.f32.mrf.mxu1  ;;  %v2058_v48 = vld [vmem:[%s3317_s16] ss:$0 sm:$0xff] }
0x11fc   :  { %2524 = verf.f32 %v1621_v24  ;;  %v1616_v50 = vadd.f32 %v2043_v44, %v1615_v49  ;;  %v2437_v44 = vld [vmem:[%s3316_s17 + $0x10] sm:$0xff]  }
0x11fd   :  { %v2274_v51 = vpop.f32.mrf.mxu1 }
0x11fe   :  { %v1622_v53 = vmul.f32 0.70710677, %v1616_v50  ;;  %v1620_v59 = vmul.f32 0.5, %v1616_v50 }
0x1200   :  { %2526 = verf.f32 %v1622_v53 }
0x1209   :  { %v2525_v54 = vpop.eup %2524 }
0x120a   :  { %v1625_v55 = vadd.f32 1.0, %v2525_v54 }
0x120c   :  { %v1627_v36 = vmul.f32 %v1625_v55, %v1619_v58 }
0x120d   :  { %v2527_v56 = vpop.eup %2526 }
0x120e   :  { %v1626_v60 = vadd.f32 1.0, %v2527_v56 }
0x1210   :  { %v1628_v63 = vmul.f32 %v1626_v60, %v1620_v59 }
0x1212   :  { %v1629_v0 = vpack.c.bf16 %v1628_v63, %v1627_v36 }
0x1214   :  { %2292 = vmatmul.mubr.bf16.vlgmr.msra.gmra.mxu0 %v1629_v0 }
0x12d4   :  { %v1728_v39 = vpop.f32.mrf.mxu0 }
0x12d5   :  { %v1735_v4 = vadd.f32 %v1728_v39, %v3177_v62 }
0x12d6   :  { %v2293_v43 = vpop.f32.mrf.mxu0 }
0x12d7   :  { %v1742_v40 = vadd.f32 %v2055_v46, %v1735_v4 }
0x12d8   :  { %v1731_v27 = vpop.f32.mrf.mxu0 }
0x12d9   :  { %v1736_v5 = vadd.f32 %v1731_v27, %v3184_v2  ;;  %v1746_v45 = vsel %vm3371_vm1, %v1742_v40, 0.0  ;;  %v1752_v35 = vmul.f32 %v1742_v40, %v1742_v40  ;;  %v2434_v2 = vld [vmem:[%s3313_s15 + $0x8] sm:$0xff]  }
0x12da   :  { %1747 = vadd.xlane.f32.xlu0 %v1746_v45  ;;  %v2294_v7 = vpop.f32.mrf.mxu0  ;;  %2296 = vmatpush3.bf16.msra.mxu1 %v2434_v2 }
0x12db   :  { %v1743_v52 = vadd.f32 %v2055_v46, %v1736_v5  ;;  %v1754_v8 = vsel %vm3372_vm4, %v1752_v35, 0.0  ;;  %2297 = vmatprep.subr.bf16.mxu1 %v2545_v32 }
0x12dd   :  { %v1749_v57 = vsel %vm3373_vm6, %v1743_v52, 0.0  ;;  %v1753_v9 = vmul.f32 %v1743_v52, %v1743_v52 }
0x12de   :  { %1755 = vadd.xlane.f32.xlu0 %v1754_v8  ;;  %1750 = vadd.xlane.f32.xlu1 %v1749_v57 }
0x12df   :  { %v1757_v62 = vsel %vm3374_vm9, %v1753_v9, 0.0  ;;  %2298 = vmatpush3.bf16.msra.mxu1 %v2435_v12 }
0x12e0   :  { %2303 = vmatprep.subr.bf16.mxu1 %v2545_v32 }
0x12e2   :  { %1758 = vadd.xlane.f32.xlu1 %v1757_v62 }
0x1363   :  { %v1748_v61 = vpop.xlane.xlu0 %1747 }
0x1364   :  { %v1760_v13 = vmul.f32 0.03125, %v1748_v61 }
0x1366   :  { %v1764_v16 = vmul.f32 %v1760_v13, %v1760_v13  ;;  %v1768_v23 = vsub.f32 %v1742_v40, %v1760_v13 }
0x1367   :  { %v1756_v3 = vpop.xlane.xlu0 %1755  ;;  %v1751_v14 = vpop.xlane.xlu1 %1750 }
0x1368   :  { %v1762_v17 = vmul.f32 0.03125, %v1756_v3  ;;  %v1761_v18 = vmul.f32 0.03125, %v1751_v14 }
0x136a   :  { %v1766_v19 = vsub.f32 %v1762_v17, %v1764_v16  ;;  %v1765_v37 = vmul.f32 %v1761_v18, %v1761_v18  ;;  %v1769_v29 = vsub.f32 %v1743_v52, %v1761_v18 }
0x136b   :  { %v1759_v15 = vpop.xlane.xlu1 %1758 }
0x136c   :  { %v1770_v6 = vadd.f32 1e-06, %v1766_v19  ;;  %v1763_v20 = vmul.f32 0.03125, %v1759_v15 }
0x136e   :  { %2528 = vrsqrt.f32 %v1770_v6  ;;  %v1767_v10 = vsub.f32 %v1763_v20, %v1765_v37 }
0x1370   :  { %v1771_v22 = vadd.f32 1e-06, %v1767_v10 }
0x1372   :  { %2530 = vrsqrt.f32 %v1771_v22 }
0x137b   :  { %v2529_v25 = vpop.eup %2528 }
0x137c   :  { %v1774_v28 = vmul.f32 %v2529_v25, %v1768_v23 }
0x137e   :  { %v1782_v31 = vmul.f32 %v2056_v21, %v1774_v28 }
0x137f   :  { %v2531_v30 = vpop.eup %2530 }
0x1380   :  { %v1775_v26 = vmul.f32 %v2531_v30, %v1769_v29  ;;  %v1790_v38 = vadd.f32 %v2057_v33, %v1782_v31 }
0x1382   :  { %v1783_v34 = vmul.f32 %v2056_v21, %v1775_v26 }
0x1384   :  { %v1791_v41 = vadd.f32 %v2057_v33, %v1783_v34 }
0x1386   :  { %v1792_v11 = vpack.c.bf16 %v1791_v41, %v1790_v38 }
0x1388   :  { %2300 = vmatmul.mubr.msk.bf16.vlgmr.msra.gmra.mxu1 %vm3375_vm10, %v1792_v11 }
0x1389   :  { %2311 = vmatprep.mubr.msk.bf16.mxu1 %vm2546_vm2, %v2545_v32  ;;  %2304 = vmatpush3.bf16.msra.mxu1 %v2436_v42 }
0x138a   :  { %2305 = vmatprep.subr.bf16.mxu1 %v2545_v32 }
0x138d   :  { %2306 = vmatpush3.bf16.msra.mxu1 %v2437_v44 }
0x138e   :  { %2307 = vmatprep.subr.bf16.mxu1 %v2545_v32 }
0x1391   :  { %2308 = vmatpush3.bf16.msra.mxu1 %v2438_v47 }
0x1392   :  { %2309 = vmatprep.subr.bf16.mxu1 %v2545_v32 }
0x1395   :  { %2310 = vmatpush3.bf16.msra.mxu1 %v2439_v1 }
0x1448   :  { %v1853_v24 = vpop.f32.mrf.mxu1 }
0x1449   :  { %v1854_v49 = vadd.f32 %v2058_v48, %v1853_v24 }
0x144a   :  { %v2301_v50 = vpop.f32.mrf.mxu1 }
0x144b   :  { %v1862_v51 = vmul.f32 0.70710677, %v1854_v49  ;;  %v1860_v60 = vmul.f32 0.5, %v1854_v49 }
0x144c   :  { %v1856_v53 = vpop.f32.mrf.mxu1 }
0x144d   :  { %2532 = verf.f32 %v1862_v51  ;;  %v1857_v54 = vadd.f32 %v2058_v48, %v1856_v53 }
0x144e   :  { %v2302_v55 = vpop.f32.mrf.mxu1 }
0x144f   :  { %v1863_v56 = vmul.f32 0.70710677, %v1857_v54  ;;  %v1861_v36 = vmul.f32 0.5, %v1857_v54 }
0x1451   :  { %2534 = verf.f32 %v1863_v56 }
0x145a   :  { %v2533_v32 = vpop.eup %2532 }
0x145b   :  { %v1866_v58 = vadd.f32 1.0, %v2533_v32 }
0x145d   :  { %v1868_v0 = vmul.f32 %v1866_v58, %v1860_v60 }
0x145e   :  { %v2535_v59 = vpop.eup %2534 }
0x145f   :  { %v1867_v63 = vadd.f32 1.0, %v2535_v59 }
0x1461   :  { %v1869_v39 = vmul.f32 %v1867_v63, %v1861_v36 }
0x1463   :  { %v1870_v46 = vpack.c.bf16 %v1869_v39, %v1868_v0 }
0x1465   :  { %2312 = vmatmul.mubr.msk.bf16.vlgmr.msra.gmra.mxu1 %vm201_vm0, %v1870_v46 }
0x1525   :  { %v1940_v4 = vpop.f32.mrf.mxu1 }
0x1526   :  { %v1947_v43 = vmul.f32 %v1940_v4, %v1940_v4 }
0x1527   :  { %v2313_v40 = vpop.f32.mrf.mxu1 }
0x1528   :  { %v1949_v27 = vsel %vm693_vm15, %v1947_v43, 0.0 }
0x1529   :  { %1950 = vadd.xlane.f32.xlu0 %v1949_v27  ;;  %v1943_v5 = vpop.f32.mrf.mxu1 }
0x152a   :  { %v1948_v45 = vmul.f32 %v1943_v5, %v1943_v5 }
0x152b   :  { %v2314_v35 = vpop.f32.mrf.mxu1 }
0x152c   :  { %v1952_v7 = vsel %vm693_vm15, %v1948_v45, 0.0 }
0x152d   :  { %1953 = vadd.xlane.f32.xlu1 %v1952_v7 }
0x15b2   :  { %v1951_v52 = vpop.xlane.xlu0 %1950 }
0x15b3   :  { %2536 = vrsqrt.f32 %v1951_v52  ;;  %vm1957_vm2 = vcmp.eq.f32.partialorder %v1951_v52, inf  ;;  %v1960_v62 = vand.u32 2147483648, %v1951_v52  ;;  %vm1959_vm0 = vcmp.eq.f32.partialorder %v1951_v52, 0.0 }
0x15b6   :  { %v1954_v8 = vpop.xlane.xlu1 %1953 }
0x15b7   :  { %2538 = vrsqrt.f32 %v1954_v8  ;;  %vm1964_vm5 = vcmp.eq.f32.partialorder %v1954_v8, inf  ;;  %v1967_v14 = vand.u32 2147483648, %v1954_v8  ;;  %vm1966_vm7 = vcmp.eq.f32.partialorder %v1954_v8, 0.0 }
0x15c0   :  { %v2537_v57 = vpop.eup %2536 }
0x15c1   :  { %v1956_v9 = vmul.f32 %v2537_v57, %v1951_v52 }
0x15c3   :  { %v1958_v2 = vsel %vm1957_vm2, %v1951_v52, %v1956_v9 }
0x15c4   :  { %v2539_v12 = vpop.eup %2538  ;;  %v1961_v61 = vsel %vm1959_vm0, %v1960_v62, %v1958_v2 }
0x15c5   :  { %v1969_v13 = vmax.f32 %v1961_v61, 1e-12  ;;  %v1963_v3 = vmul.f32 %v2539_v12, %v1954_v8 }
0x15c7   :  { %2540 = vrcp.f32 %v1969_v13  ;;  %v1965_v16 = vsel %vm1964_vm5, %v1954_v8, %v1963_v3 }
0x15c8   :  { %v1968_v17 = vsel %vm1966_vm7, %v1967_v14, %v1965_v16 }
0x15c9   :  { %v1970_v18 = vmax.f32 %v1968_v17, 1e-12 }
0x15cb   :  { %2542 = vrcp.f32 %v1970_v18 }
0x15d4   :  { %v2541_v19 = vpop.eup %2540 }
0x15d5   :  { %v1972_v15 = vmul.f32 %v2541_v19, %v1940_v4 }
0x15d7   :  { %1975 = vst.msk [vmem:[%s3318_s18] sm:$0xff] %vm693_vm15, %v1972_v15 }
0x15d8   :  { %v2543_v6 = vpop.eup %2542 }
0x15d9   :  { %v1974_v37 = vmul.f32 %v2543_v6, %v1943_v5 }
0x15db   :  { %1976 = vst.msk [vmem:[%s3318_s18 + $0x8] sm:$0xff] %vm693_vm15, %v1974_v37 }

</bundles_post_ra>
